<compile_context>
chip_gen: v7x
topology: tpu7x:2x2x1
jax: 0.10.0
libtpu: 0.0.40
codegen_flags: <defaults>
</compile_context>

<pallas_src>
import math
from functools import partial

import jax
import jax.numpy as jnp
from jax.experimental import pallas as pl
from jax.experimental.pallas import tpu as pltpu


def _round_up(x, m):
    return ((x + m - 1) // m) * m


# ----------------------------- in-kernel helpers -----------------------------

def _erf(x):
    # Exact-GELU path of F.gelu uses erf; lax.erf has no Mosaic lowering, so use
    # Abramowitz & Stegun 7.1.26 (max abs err ~1.5e-7).  The rational term uses the
    # EUP approximate reciprocal (otherwise-idle slot).
    # TODO(synk): replace with a native erf lowering if/when Mosaic provides one.
    a1, a2, a3, a4, a5 = 0.254829592, -0.284496736, 1.421413741, -1.453152027, 1.061405429
    p = 0.3275911
    sgn = jnp.where(x >= 0.0, 1.0, -1.0)
    ax = jnp.abs(x)
    t = pl.reciprocal(1.0 + p * ax, approx=True)
    poly = ((((a5 * t + a4) * t + a3) * t + a2) * t + a1) * t
    return sgn * (1.0 - poly * jnp.exp(-ax * ax))


def _gelu_exact(x):
    return 0.5 * x * (1.0 + _erf(x * (1.0 / math.sqrt(2.0))))


def _layernorm(x, w, b, eps=1e-6):          # eps=1e-6 matches nn.LayerNorm(dim, eps=1e-06)
    mu = jnp.mean(x, axis=-1, keepdims=True)
    var = jnp.mean(jnp.square(x - mu), axis=-1, keepdims=True)
    return (x - mu) * jax.lax.rsqrt(var + eps) * w + b


def _softmax_lastdim(s):
    s = s - jnp.max(s, axis=-1, keepdims=True)
    e = jnp.exp(s)
    return e * pl.reciprocal(jnp.sum(e, axis=-1, keepdims=True), approx=True)


# ---------------- patch embed + pos embed + cls token (fused) ----------------

def _embed_kernel(num_patches, t_pad, p_ref, w_ref, b_ref, pos_ref, cls_ref, o_ref):
    # p_ref: (1, S, P) bf16, w_ref: (P, D) bf16, b_ref: (1, D) f32,
    # pos_ref: (1, S, D) f32, cls_ref: (1, 1, D) f32, o_ref: (1, Tp, D) f32
    S = num_patches
    y = jnp.dot(p_ref[0], w_ref[...], preferred_element_type=jnp.float32)
    y = y + b_ref[...] + pos_ref[0]                       # pos added to patch tokens only
    rows = [cls_ref[0], y]
    pad = t_pad - (S + 1)
    if pad > 0:
        rows.append(jnp.zeros((pad, y.shape[1]), jnp.float32))
    o_ref[0] = jnp.concatenate(rows, axis=0).astype(o_ref.dtype)


def embed_tokens(patches, patch_w, patch_b, pos, cls, t_pad):
    B, S, P = patches.shape
    D = patch_w.shape[1]
    return pl.pallas_call(
        partial(_embed_kernel, S, t_pad),
        out_shape=jax.ShapeDtypeStruct((B, t_pad, D), jnp.float32),
        grid=(B,),
        in_specs=[
            pl.BlockSpec((1, S, P), lambda b: (b, 0, 0)),
            pl.BlockSpec((P, D), lambda b: (0, 0)),
            pl.BlockSpec((1, D), lambda b: (0, 0)),
            pl.BlockSpec((1, S, D), lambda b: (0, 0, 0)),
            pl.BlockSpec((1, 1, D), lambda b: (0, 0, 0)),
        ],
        out_specs=pl.BlockSpec((1, t_pad, D), lambda b: (b, 0, 0)),
        compiler_params=pltpu.CompilerParams(dimension_semantics=("parallel",)),
    )(patches.astype(jnp.bfloat16), patch_w.astype(jnp.bfloat16), patch_b, pos, cls)


# ------------------- full encoder stack (all layers, one call) ----------------

def _encoder_stack_kernel(num_heads, head_dim, n_valid,
                          x_ref,
                          ln1w, ln1b, wqkv, bqkv, wo, bo, ls1,
                          ln2w, ln2b, w1, b1, w2, b2, ls2,
                          nw, nb,
                          o_ref,
                          x_sc):
    l = pl.program_id(1)
    H, Dh = num_heads, head_dim
    Tp, D = x_sc.shape
    scale = head_dim ** (-0.5)
    bf = jnp.bfloat16

    # Load the activation into the resident VMEM scratch at the first layer only;
    # for l > 0 the scratch carries the previous layer's output (no HBM round trip).
    @pl.when(l == 0)
    def _():
        x_sc[...] = x_ref[0]

    x = x_sc[...]                                         # (Tp, D) f32

    # --- attention branch: x + ls1 * Attn(LN1(x)) ---
    h = _layernorm(x, ln1w[0], ln1b[0])
    qkv = jnp.dot(h.astype(bf), wqkv[0], preferred_element_type=jnp.float32) + bqkv[0]

    # Fold the attention scale into Q (f32, Tp*D muls) instead of scaling the
    # (H, Tp, Tp) score tensor; then drop to bf16 for the MXU.
    q_bf = (qkv[:, :D] * scale).astype(bf)
    k_bf = qkv[:, D:2 * D].astype(bf)
    v_bf = qkv[:, 2 * D:3 * D].astype(bf)

    # split heads -> (H, Tp, Dh); built from static lane slices + leading-axis stack
    qh = jnp.stack([q_bf[:, hi * Dh:(hi + 1) * Dh] for hi in range(H)], axis=0)
    kh = jnp.stack([k_bf[:, hi * Dh:(hi + 1) * Dh] for hi in range(H)], axis=0)
    vh = jnp.stack([v_bf[:, hi * Dh:(hi + 1) * Dh] for hi in range(H)], axis=0)

    s = jnp.einsum('hqd,hkd->hqk', qh, kh,
                   preferred_element_type=jnp.float32)               # (H, Tp, Tp) f32
    if Tp > n_valid:                                       # mask padded keys
        key_idx = jax.lax.broadcasted_iota(jnp.int32, (1, 1, Tp), 2)
        s = s + jnp.where(key_idx < n_valid, 0.0, -1e30)
    p = _softmax_lastdim(s)
    o = jnp.einsum('hqk,hkd->hqd', p.astype(bf), vh,
                   preferred_element_type=jnp.float32)               # (H, Tp, Dh) f32

    # merge heads (== transpose(2,1).flatten(2)) and output projection
    attn = jnp.concatenate([o[hi] for hi in range(H)], axis=-1)      # (Tp, D)
    attn = jnp.dot(attn.astype(bf), wo[0], preferred_element_type=jnp.float32) + bo[0]
    x = x + ls1[0] * attn

    # --- MLP branch: x + ls2 * MLP(LN2(x)) ---
    h2 = _layernorm(x, ln2w[0], ln2b[0])
    m = jnp.dot(h2.astype(bf), w1[0], preferred_element_type=jnp.float32) + b1[0]
    m = _gelu_exact(m)
    m = jnp.dot(m.astype(bf), w2[0], preferred_element_type=jnp.float32) + b2[0]
    x = x + ls2[0] * m

    x_sc[...] = x                                          # carry to the next layer

    # final LayerNorm fused into the last layer step
    @pl.when(l == pl.num_programs(1) - 1)
    def _():
        o_ref[0] = _layernorm(x, nw[...], nb[...]).astype(o_ref.dtype)


def encoder_stack(x, params, num_heads, n_valid):
    B, Tp, D = x.shape
    L = params["wqkv"].shape[0]
    H4 = params["w1"].shape[2]
    Dh = D // num_heads
    bf = jnp.bfloat16

    def wspec(shape):  # per-layer stacked parameter, indexed by the layer grid axis
        return pl.BlockSpec((1,) + shape, lambda b, l: (l,) + (0,) * len(shape))

    in_specs = [
        pl.BlockSpec((1, Tp, D), lambda b, l: (b, 0, 0)),   # x (fetched once per b)
        wspec((1, D)), wspec((1, D)),                       # ln1 w, b
        wspec((D, 3 * D)), wspec((1, 3 * D)),               # fused qkv
        wspec((D, D)), wspec((1, D)),                       # out proj
        wspec((1, D)),                                      # layer scale 1
        wspec((1, D)), wspec((1, D)),                       # ln2 w, b
        wspec((D, H4)), wspec((1, H4)),                     # mlp hidden
        wspec((H4, D)), wspec((1, D)),                      # mlp output
        wspec((1, D)),                                      # layer scale 2
        pl.BlockSpec((1, D), lambda b, l: (0, 0)),          # final norm w
        pl.BlockSpec((1, D), lambda b, l: (0, 0)),          # final norm b
    ]
    args = (x,
            params["ln1_w"], params["ln1_b"],
            params["wqkv"].astype(bf), params["bqkv"],
            params["wo"].astype(bf), params["bo"],
            params["ls1"],
            params["ln2_w"], params["ln2_b"],
            params["w1"].astype(bf), params["b1"],
            params["w2"].astype(bf), params["b2"],
            params["ls2"],
            params["norm_w"], params["norm_b"])

    return pl.pallas_call(
        partial(_encoder_stack_kernel, num_heads, Dh, n_valid),
        out_shape=jax.ShapeDtypeStruct((B, Tp, D), jnp.float32),
        grid=(B, L),                                        # batch parallel, layers sequential
        in_specs=in_specs,
        out_specs=pl.BlockSpec((1, Tp, D), lambda b, l: (b, 0, 0)),
        scratch_shapes=[pltpu.VMEM((Tp, D), jnp.float32)],  # resident activation
        compiler_params=pltpu.CompilerParams(
            dimension_semantics=("parallel", "arbitrary"),
            # raise v5e's 16 MiB default scope; 32 MiB is within every chip's budget
            vmem_limit_bytes=32 * 1024 * 1024),
    )(*args)


# ------------------------------ full forward ---------------------------------

def vision_encoder_forward(x_nchw, params, patch_size, num_heads):
    B, C, Himg, Wimg = x_nchw.shape
    ps = patch_size
    nh, nw = Himg // ps, Wimg // ps
    # patchify NCHW -> (B, S, C*ps*ps); inner order (C, ph, pw) matches Conv2d
    # weight flattening; patch order row-major == conv output flatten(2).transpose(2,1)
    patches = (x_nchw.reshape(B, C, nh, ps, nw, ps)
               .transpose(0, 2, 4, 1, 3, 5)
               .reshape(B, nh * nw, C * ps * ps))

    # TODO(synk): interpolate_pos_encoding bicubic path (non-224 / non-square inputs)
    # not implemented; with 224x224 input PyTorch returns pos_embed as-is.
    S = nh * nw
    T = S + 1                                   # + cls token
    t_pad = _round_up(T, 128) if T > 96 else _round_up(T, 8)

    tok = embed_tokens(patches, params["patch_w"], params["patch_b"],
                       params["pos_embed"], params["cls_token"], t_pad)
    y = encoder_stack(tok, params, num_heads, T)
    return y[:, :T, :]                          # drop padded tokens


# ------------------------------ parameter init -------------------------------

def init_params(key, dim, patch_size, num_layers):
    n_patch = 224 // patch_size
    seq_len = n_patch ** 2
    P = 3 * patch_size * patch_size
    hidden = dim * 4
    keys = jax.random.split(key, 2 + num_layers)

    def lin(k, fan_in, fan_out):
        kw, kb = jax.random.split(k)
        w = jax.random.normal(kw, (fan_in, fan_out), jnp.float32) * 0.02
        b = jax.random.normal(kb, (1, fan_out), jnp.float32) * 0.02
        return w, b

    patch_w, patch_b = lin(keys[0], P, dim)
    pos_embed = jax.random.normal(keys[1], (1, seq_len, dim), jnp.float32) * 0.02
    cls_token = jnp.zeros((1, 1, dim), jnp.float32)

    stk = dict(wqkv=[], bqkv=[], wo=[], bo=[], w1=[], b1=[], w2=[], b2=[])
    for i in range(num_layers):
        kk = jax.random.split(keys[2 + i], 6)
        wq, bq = lin(kk[0], dim, dim)
        wk, bk = lin(kk[1], dim, dim)
        wv, bv = lin(kk[2], dim, dim)
        wo, bo = lin(kk[3], dim, dim)
        w1, b1 = lin(kk[4], dim, hidden)
        w2, b2 = lin(kk[5], hidden, dim)
        stk["wqkv"].append(jnp.concatenate([wq, wk, wv], axis=1))
        stk["bqkv"].append(jnp.concatenate([bq, bk, bv], axis=1))
        stk["wo"].append(wo); stk["bo"].append(bo)
        stk["w1"].append(w1); stk["b1"].append(b1)
        stk["w2"].append(w2); stk["b2"].append(b2)

    L = num_layers
    params = dict(
        patch_w=patch_w, patch_b=patch_b, pos_embed=pos_embed, cls_token=cls_token,
        ln1_w=jnp.ones((L, 1, dim), jnp.float32), ln1_b=jnp.zeros((L, 1, dim), jnp.float32),
        ln2_w=jnp.ones((L, 1, dim), jnp.float32), ln2_b=jnp.zeros((L, 1, dim), jnp.float32),
        ls1=jnp.full((L, 1, dim), 1e-5, jnp.float32),
        ls2=jnp.full((L, 1, dim), 1e-5, jnp.float32),
        norm_w=jnp.ones((1, dim), jnp.float32), norm_b=jnp.zeros((1, dim), jnp.float32),
    )
    params.update({k: jnp.stack(v, axis=0) for k, v in stk.items()})
    return params


# ----------------------------------- main ------------------------------------

if __name__ == "__main__":
    dim, patch_size, num_layers, num_heads = 64, 56, 2, 4   # n_patch=4, seq=16 (+1 cls)
    assert dim % num_heads == 0
    key = jax.random.PRNGKey(0)
    kx, kp = jax.random.split(key)

    x = jax.random.normal(kx, (2, 3, 224, 224), jnp.float32)   # NCHW, like PyTorch
    params = init_params(kp, dim, patch_size, num_layers)

    out = vision_encoder_forward(x, params, patch_size, num_heads)
    out = jax.block_until_ready(out)

    expected_tokens = (224 // patch_size) ** 2 + 1
    assert out.shape == (2, expected_tokens, dim), out.shape
    assert bool(jnp.all(jnp.isfinite(out)))
    print("KERNEL_OK")
</pallas_src>

<mosaic_0001>
module attributes {stable_mosaic.version = 11 : i64} {
  func.func @_embed_kernel(%arg0: i32, %arg1: memref<1x16x9408xbf16, #tpu.memory_space<vmem>>, %arg2: memref<9408x64xbf16, #tpu.memory_space<vmem>>, %arg3: memref<1x64xf32, #tpu.memory_space<vmem>>, %arg4: memref<1x16x64xf32, #tpu.memory_space<vmem>>, %arg5: memref<1x1x64xf32, #tpu.memory_space<vmem>>, %arg6: memref<1x24x64xf32, #tpu.memory_space<vmem>>) attributes {dimension_semantics = [#tpu.dimension_semantics<parallel>], iteration_bounds = array<i64: 2>, scalar_prefetch = 0 : i64, scratch_operands = 0 : i64, tpu.core_type = #tpu.core_type<tc>, window_params = [{transform_indices = @transform_0, window_bounds = array<i64: 1, 16, 9408>}, {pipeline_mode = #tpu.pipeline_mode<synchronous>, transform_indices = @transform_1, window_bounds = array<i64: 9408, 64>}, {pipeline_mode = #tpu.pipeline_mode<synchronous>, transform_indices = @transform_2, window_bounds = array<i64: 1, 64>}, {pipeline_mode = #tpu.pipeline_mode<synchronous>, transform_indices = @transform_3, window_bounds = array<i64: 1, 16, 64>}, {pipeline_mode = #tpu.pipeline_mode<synchronous>, transform_indices = @transform_4, window_bounds = array<i64: 1, 1, 64>}, {transform_indices = @transform_5, window_bounds = array<i64: 1, 24, 64>}]} {
    %c0 = arith.constant 0 : index
    %c0_0 = arith.constant 0 : index
    %c0_1 = arith.constant 0 : index
    %0 = vector.load %arg1[%c0, %c0_0, %c0_1] : memref<1x16x9408xbf16, #tpu.memory_space<vmem>>, vector<1x16x9408xbf16>
    %1 = vector.shape_cast %0 : vector<1x16x9408xbf16> to vector<16x9408xbf16>
    %c0_2 = arith.constant 0 : index
    %c0_3 = arith.constant 0 : index
    %2 = vector.load %arg2[%c0_2, %c0_3] : memref<9408x64xbf16, #tpu.memory_space<vmem>>, vector<9408x64xbf16>
    %cst = arith.constant dense<0.000000e+00> : vector<16x64xf32>
    %3 = tpu.matmul %1, %2, %cst {dimension_numbers = #tpu.dot_dimension_numbers<[1], [0], [0], [1], [0, 0, 1, 1], [], []>} : vector<16x9408xbf16>, vector<9408x64xbf16>, vector<16x64xf32> -> vector<16x64xf32>
    %c0_4 = arith.constant 0 : index
    %c0_5 = arith.constant 0 : index
    %4 = vector.load %arg3[%c0_4, %c0_5] : memref<1x64xf32, #tpu.memory_space<vmem>>, vector<1x64xf32>
    %5 = vector.broadcast %4 : vector<1x64xf32> to vector<16x64xf32>
    %6 = arith.addf %3, %5 : vector<16x64xf32>
    %c0_6 = arith.constant 0 : index
    %c0_7 = arith.constant 0 : index
    %c0_8 = arith.constant 0 : index
    %7 = vector.load %arg4[%c0_6, %c0_7, %c0_8] : memref<1x16x64xf32, #tpu.memory_space<vmem>>, vector<1x16x64xf32>
    %8 = vector.shape_cast %7 : vector<1x16x64xf32> to vector<16x64xf32>
    %9 = arith.addf %6, %8 : vector<16x64xf32>
    %c0_9 = arith.constant 0 : index
    %c0_10 = arith.constant 0 : index
    %c0_11 = arith.constant 0 : index
    %10 = vector.load %arg5[%c0_9, %c0_10, %c0_11] : memref<1x1x64xf32, #tpu.memory_space<vmem>>, vector<1x1x64xf32>
    %11 = vector.shape_cast %10 : vector<1x1x64xf32> to vector<1x64xf32>
    %cst_12 = arith.constant 0.000000e+00 : f32
    %12 = vector.broadcast %cst_12 : f32 to vector<7x64xf32>
    %13 = tpu.concatenate %11, %9, %12 in 0 : vector<1x64xf32>, vector<16x64xf32>, vector<7x64xf32> -> vector<24x64xf32>
    %c0_13 = arith.constant 0 : index
    %c0_14 = arith.constant 0 : index
    %c0_15 = arith.constant 0 : index
    %14 = vector.load %arg6[%c0_13, %c0_14, %c0_15] : memref<1x24x64xf32, #tpu.memory_space<vmem>>, vector<1x24x64xf32>
    %15 = vector.shape_cast %14 : vector<1x24x64xf32> to vector<24x64xf32>
    %16 = vector.shape_cast %13 : vector<24x64xf32> to vector<1x24x64xf32>
    tpu.vector_store %arg6[%c0_13, %c0_14, %c0_15], %16 {strides = array<i32>} : memref<1x24x64xf32, #tpu.memory_space<vmem>>, vector<1x24x64xf32>,
    return
  }
  func.func @transform_0(%arg0: i32) -> (i32, i32, i32) {
    %c0_i32 = arith.constant 0 : i32
    %c0_i32_0 = arith.constant 0 : i32
    %c0_i32_1 = arith.constant 0 : i32
    return %arg0, %c0_i32, %c0_i32_0 : i32, i32, i32
  }
  func.func @transform_1(%arg0: i32) -> (i32, i32) {
    %c0_i32 = arith.constant 0 : i32
    %c0_i32_0 = arith.constant 0 : i32
    %c0_i32_1 = arith.constant 0 : i32
    return %c0_i32, %c0_i32_0 : i32, i32
  }
  func.func @transform_2(%arg0: i32) -> (i32, i32) {
    %c0_i32 = arith.constant 0 : i32
    %c0_i32_0 = arith.constant 0 : i32
    %c0_i32_1 = arith.constant 0 : i32
    return %c0_i32, %c0_i32_0 : i32, i32
  }
  func.func @transform_3(%arg0: i32) -> (i32, i32, i32) {
    %c0_i32 = arith.constant 0 : i32
    %c0_i32_0 = arith.constant 0 : i32
    %c0_i32_1 = arith.constant 0 : i32
    %c0_i32_2 = arith.constant 0 : i32
    return %c0_i32, %c0_i32_0, %c0_i32_1 : i32, i32, i32
  }
  func.func @transform_4(%arg0: i32) -> (i32, i32, i32) {
    %c0_i32 = arith.constant 0 : i32
    %c0_i32_0 = arith.constant 0 : i32
    %c0_i32_1 = arith.constant 0 : i32
    %c0_i32_2 = arith.constant 0 : i32
    return %c0_i32, %c0_i32_0, %c0_i32_1 : i32, i32, i32
  }
  func.func @transform_5(%arg0: i32) -> (i32, i32, i32) {
    %c0_i32 = arith.constant 0 : i32
    %c0_i32_0 = arith.constant 0 : i32
    %c0_i32_1 = arith.constant 0 : i32
    return %arg0, %c0_i32, %c0_i32_0 : i32, i32, i32
  }
}

</mosaic_0001>

<bundles_post_ra>
// kernel: tpu_custom_call.1
= control target key start
LH: loop header
LB: loop body
LE: loop exit
PB: predicated region body
PF: predicated region fallthrough
CT: control target
= control target key end

     0   :  { %10 = vsyncpa [#allocation3], 0  ;;  %s11341_s0 = inlined_call_operand.vmem [shape: bf16[2,16,9408], index: 0, kind: input, shape index: {}]   ;;  %s11342_s1 = inlined_call_operand.vmem [shape: bf16[9408,64], index: 1, kind: input, shape index: {}]   ;;  %s11343_s2 = inlined_call_operand.vmem [shape: f32[1,64], index: 2, kind: input, shape index: {}]   ;;  %s11344_s3 = inlined_call_operand.vmem [shape: f32[1,16,64], index: 3, kind: input, shape index: {}]   ;;  %s11345_s4 = inlined_call_operand.vmem [shape: f32[1,1,64], index: 4, kind: input, shape index: {}]   ;;  %s11346_s5 = inlined_call_operand.hbm [shape: f32[2,24,64], index: 5, kind: output, shape index: {}]  }
   0x1   :  { %12 = vsyncpa [#allocation3 + $0x1], 0  ;;  %s9300_s18 = smov 0   ;;  %s9302_s19 = smov 0  }
   0x2   :  { %s9304_s20 = smov 0   ;;  %s9306_s21 = smov 0  }
   0x3 LB: > { %s9321_s22 = sadd.s32 4294967295, %s9264_s21   ;;  %s6994_s23 = sadd.s32 4294967294, %s9264_s21   ;;  %s9264_s21 = sphi %s9306_s21, %s11352_s21   ;;  %s9260_s20 = sphi %s9304_s20, %s11351_s20   ;;  %s9256_s19 = sphi %s9302_s19, %s11350_s19   ;;  %s9252_s18 = sphi %s9300_s18, %s11349_s18  }
   0x4   : > { %s9325_s24 = sadd.s32 1, %s9264_s21   ;;  %s135_s25 = sadd.s32 1, %s9260_s20 }
   0x5   : > { %s132_s26 = ssub.s32 %s9264_s21, %s9325_s24  ;;  %p145_p0 = scmp.ne.s32.totalorder %s9260_s20, %s9256_s19 }
   0x6   : > { %p133_p1 = scmp.eq.s32.totalorder %s132_s26, 0  ;;  %p146_p2 = scmp.eq.s32.totalorder %s9321_s22, 1 }
   0x7   : > { %p151_p3 = scmp.ne.s32.totalorder %s9256_s19, %s9252_s18  ;;  %p152_p4 = scmp.eq.s32.totalorder %s6994_s23, 1 }
   0x8   : > { %s9336_s27 = scalar_select %p133_p1, %s9260_s20, %s135_s25  }
   0x9   : > { %p9338_p5 = por %p146_p2, %p145_p0  ;;  %p9342_p6 = por %p152_p4, %p151_p3 }
   0xa   : > { %p6997_p7 = scmp.ge.s32.totalorder %s9264_s21, 1  ;;  %p190_p8 = scmp.lt.s32.totalorder %s9264_s21, 3 }
   0xc   : > { %p191_p9 = pnand %p6997_p7, %p190_p8 }
   0xd   : > { %v8503_v0 = vld [vmem:[%s11342_s1 + $0x40] sm:$0xff] (!%p191_p9)   ;;  %v8505_v2 = vld [vmem:[%s11342_s1 + $0x48] sm:$0xff] (!%p191_p9)   ;;  %v8507_v4 = vld [vmem:[%s11342_s1 + $0x50] sm:$0xff] (!%p191_p9)   ;;  %p218_p10 = scmp.lt.s32.totalorder (!%p191_p9), %s9321_s22, 1  ;;  %vm5378_vm0 = vcmask (!%p191_p9), 523264   ;;  %s8460_s30 = smul.u32 (!%p191_p9), 384, %s9321_s22 }
   0xe   : > { %194 = sbr.rel (%p191_p9) target bundleno = 868 (0x364), region = 40  ;;  %v8504_v1 = vld [vmem:[%s11342_s1] sm:$0xff] (!%p191_p9)   ;;  %7666 = vmatprep.subr.bf16.mxu1 (!%p191_p9), %v8503_v0  ;;  %v8506_v3 = vld [vmem:[%s11342_s1 + $0x8] sm:$0xff] (!%p191_p9)   ;;  %v8508_v5 = vld [vmem:[%s11342_s1 + $0x10] sm:$0xff] (!%p191_p9)   ;;  %vm6906_vm1 = vcmask (!%p191_p9), 1040384   ;;  %s9267_s15 = smov (!%p191_p9), [#allocation2]  }
   0xf   : > { %7667 = vmatpush3.bf16.msra.mxu1 (!%p191_p9), %v8504_v1  ;;  %v8509_v6 = vld [vmem:[%s11342_s1 + $0x58] sm:$0xff] (!%p191_p9)   ;;  %v8513_v8 = vld [vmem:[%s11342_s1 + $0x140] sm:$0xff] (!%p191_p9)   ;;  %v8517_v12 = vld [vmem:[%s11342_s1 + $0x148] sm:$0xff] (!%p191_p9)   ;;  %s11291_s12 = scalar_lea.hbm (!%p191_p9), %s11346_s5, %s8460_s30 }
  0x10   : > { %7668 = vmatprep.subr.bf16.mxu1 (!%p191_p9), %v8505_v2  ;;  %v8510_v7 = vld [vmem:[%s11342_s1 + $0x18] sm:$0xff] (!%p191_p9)   ;;  %v8514_v9 = vld [vmem:[%s11342_s1 + $0x100] sm:$0xff] (!%p191_p9)   ;;  %7710 = vmatprep.subr.bf16.mxu0 (!%p191_p9), %v8513_v8  ;;  %v8518_v13 = vld [vmem:[%s11342_s1 + $0x108] sm:$0xff] (!%p191_p9)  }
  0x11   : > { %v8511_v10 = vld [vmem:[%s11342_s1 + $0x60] sm:$0xff] (!%p191_p9)   ;;  %7711 = vmatpush3.bf16.msra.mxu0 (!%p191_p9), %v8514_v9  ;;  %v8515_v14 = vld [vmem:[%s11342_s1 + $0x68] sm:$0xff] (!%p191_p9)   ;;  %v8521_v16 = vld [vmem:[%s11342_s1 + $0x150] sm:$0xff] (!%p191_p9)  }
  0x12   : > { %v8512_v11 = vld [vmem:[%s11342_s1 + $0x20] sm:$0xff] (!%p191_p9)   ;;  %7712 = vmatprep.subr.bf16.mxu0 (!%p191_p9), %v8517_v12  ;;  %v8516_v15 = vld [vmem:[%s11342_s1 + $0x28] sm:$0xff] (!%p191_p9)   ;;  %v8522_v17 = vld [vmem:[%s11342_s1 + $0x110] sm:$0xff] (!%p191_p9)  }
  0x13   : > { %7669 = vmatpush3.bf16.msra.mxu1 (!%p191_p9), %v8506_v3  ;;  %v8519_v18 = vld [vmem:[%s11342_s1 + $0x70] sm:$0xff] (!%p191_p9)   ;;  %v8525_v20 = vld [vmem:[%s11342_s1 + $0x158] sm:$0xff] (!%p191_p9)   ;;  %v8530_v25 = vld [vmem:[%s11342_s1 + $0xc0] sm:$0xff] (!%p191_p9)  }
  0x14   : > { %7670 = vmatprep.subr.bf16.mxu1 (!%p191_p9), %v8507_v4  ;;  %v8520_v19 = vld [vmem:[%s11342_s1 + $0x30] sm:$0xff] (!%p191_p9)   ;;  %v8523_v21 = vld [vmem:[%s11342_s1 + $0x78] sm:$0xff] (!%p191_p9)   ;;  %v8532_v27 = vld [vmem:[%s11342_s1 + $0x160] sm:$0xff] (!%p191_p9)  }
  0x15   : > { %s219_s13 = scalar_select %p218_p10, %s9321_s22, 1  ;;  %7713 = vmatpush3.bf16.msra.mxu0 %v8518_v13  ;;  %v8529_v23 = vld [vmem:[%s11342_s1 + $0x118] sm:$0xff]   ;;  %v8533_v28 = vld [vmem:[%s11342_s1 + $0x120] sm:$0xff]   ;;  %v8534_v30 = vld [vmem:[%s11342_s1 + $0xc8] sm:$0xff]  }
  0x16   : > { %7714 = vmatprep.subr.bf16.mxu0 %v8521_v16  ;;  %v8524_v24 = vld [vmem:[%s11342_s1 + $0x38] sm:$0xff]   ;;  %v8531_v29 = vld [vmem:[%s11342_s1 + $0x80] sm:$0xff]   ;;  %v8536_v31 = vld [vmem:[%s11342_s1 + $0x168] sm:$0xff]  }
  0x17   : > { %7671 = vmatpush3.bf16.msra.mxu1 %v8508_v5  ;;  %s8459_s6 = smul.u32 592, %s219_s13  ;;  %v8537_v32 = vld [vmem:[%s11342_s1 + $0x128] sm:$0xff]   ;;  %v8538_v34 = vld [vmem:[%s11342_s1 + $0xd0] sm:$0xff]   ;;  %v8542_v38 = vld [vmem:[%s11342_s1 + $0xd8] sm:$0xff]  }
  0x18   : > { %7672 = vmatprep.subr.bf16.mxu1 %v8509_v6  ;;  %v8535_v33 = vld [vmem:[%s11342_s1 + $0x88] sm:$0xff]   ;;  %v8540_v35 = vld [vmem:[%s11342_s1 + $0x170] sm:$0xff]   ;;  %v8544_v39 = vld [vmem:[%s11342_s1 + $0x178] sm:$0xff]  }
  0x19   : > { %7715 = vmatpush3.bf16.msra.mxu0 %v8522_v17  ;;  %s9413_s17 = scalar_lea.vmem %s11341_s0, %s8459_s6  ;;  %v8541_v36 = vld [vmem:[%s11342_s1 + $0x130] sm:$0xff]   ;;  %v8545_v40 = vld [vmem:[%s11342_s1 + $0x138] sm:$0xff]   ;;  %v8546_v42 = vld [vmem:[%s11342_s1 + $0xe0] sm:$0xff]  }
  0x1a   : > { %7716 = vmatprep.subr.bf16.mxu0 %v8525_v20  ;;  %v8528_v22 = vld [vmem:[%s9413_s17 + $0x4] ss:$296 sps:$4 sm:$0xff]   ;;  %v8526_v26 = vld [vmem:[%s9413_s17] ss:$296 sps:$4 sm:$0xff]   ;;  %v8539_v37 = vld [vmem:[%s11342_s1 + $0x90] sm:$0xff]  }
  0x1b   : > { %7673 = vmatpush3.bf16.msra.mxu1 %v8510_v7  ;;  %5414 = vmatprep.mubr.bf16.mxu1 %v8528_v22  ;;  %v8543_v41 = vld [vmem:[%s11342_s1 + $0x98] sm:$0xff]   ;;  %v8551_v45 = vld [vmem:[%s11342_s1 + $0x240] sm:$0xff]   ;;  %v8553_v48 = vld [vmem:[%s11342_s1 + $0xe8] sm:$0xff]  }
  0x1c   : > { %7674 = vmatprep.subr.bf16.mxu1 %v8511_v10  ;;  %v8548_v43 = vld [vmem:[%s9413_s17 + $0x10] ss:$296 sps:$4 sm:$0xff]   ;;  %v8550_v44 = vld [vmem:[%s9413_s17 + $0x14] ss:$296 sps:$4 sm:$0xff]   ;;  %v8552_v46 = vld [vmem:[%s11342_s1 + $0x200] sm:$0xff]  }
  0x1d   : > { %7717 = vmatpush3.bf16.msra.mxu0 %v8529_v23  ;;  %5496 = vmatprep.mubr.bf16.mxu0 %v8550_v44  ;;  %v8547_v47 = vld [vmem:[%s11342_s1 + $0xa0] sm:$0xff]   ;;  %v8555_v49 = vld [vmem:[%s11342_s1 + $0x248] sm:$0xff]   ;;  %v8557_v52 = vld [vmem:[%s11342_s1 + $0xf0] sm:$0xff]  }
  0x1e   : > { %7718 = vmatprep.subr.bf16.mxu0 %v8532_v27  ;;  %v8556_v50 = vld [vmem:[%s11342_s1 + $0x208] sm:$0xff]   ;;  %v8559_v53 = vld [vmem:[%s11342_s1 + $0x250] sm:$0xff]   ;;  %v8561_v56 = vld [vmem:[%s11342_s1 + $0xf8] sm:$0xff]  }
  0x1f   : > { %7675 = vmatpush3.bf16.msra.mxu1 %v8512_v11  ;;  %v8554_v51 = vld [vmem:[%s11342_s1 + $0xa8] sm:$0xff]   ;;  %v8560_v54 = vld [vmem:[%s11342_s1 + $0x210] sm:$0xff]   ;;  %v8563_v57 = vld [vmem:[%s11342_s1 + $0x258] sm:$0xff]  }
  0x20   : > { %7676 = vmatprep.subr.bf16.mxu1 %v8515_v14  ;;  %v8558_v55 = vld [vmem:[%s11342_s1 + $0xb0] sm:$0xff]   ;;  %v8562_v58 = vld [vmem:[%s11342_s1 + $0xb8] sm:$0xff]   ;;  %v8568_v62 = vld [vmem:[%s11342_s1 + $0x1c0] sm:$0xff]  }
  0x21   : > { %7719 = vmatpush3.bf16.msra.mxu0 %v8533_v28  ;;  %v8566_v59 = vld [vmem:[%s9413_s17 + $0xc] ss:$296 sps:$4 sm:$0xff]   ;;  %v8567_v60 = vld [vmem:[%s11342_s1 + $0x218] sm:$0xff]   ;;  %v8564_v61 = vld [vmem:[%s9413_s17 + $0x8] ss:$296 sps:$4 sm:$0xff]  }
  0x22   : > { %7720 = vmatprep.subr.bf16.mxu0 %v8536_v31  ;;  %v8569_v63 = vld [vmem:[%s11342_s1 + $0x180] sm:$0xff]   ;;  %v8572_v2 = vld [vmem:[%s11342_s1 + $0x1c8] sm:$0xff]   ;;  %v8576_v6 = vld [vmem:[%s11342_s1 + $0x1d0] sm:$0xff]  }
  0x23   : > { %7677 = vmatpush3.bf16.msra.mxu1 %v8516_v15  ;;  %v8570_v0 = vld [vmem:[%s11342_s1 + $0x260] sm:$0xff]   ;;  %v8573_v3 = vld [vmem:[%s11342_s1 + $0x188] sm:$0xff]   ;;  %v8577_v7 = vld [vmem:[%s11342_s1 + $0x190] sm:$0xff]  }
  0x24   : > { %7678 = vmatprep.subr.bf16.mxu1 %v8519_v18  ;;  %v8571_v1 = vld [vmem:[%s11342_s1 + $0x220] sm:$0xff]   ;;  %v8574_v4 = vld [vmem:[%s11342_s1 + $0x268] sm:$0xff]   ;;  %v8578_v8 = vld [vmem:[%s11342_s1 + $0x270] sm:$0xff]  }
  0x25   : > { %7721 = vmatpush3.bf16.msra.mxu0 %v8537_v32  ;;  %v8575_v5 = vld [vmem:[%s11342_s1 + $0x228] sm:$0xff]   ;;  %v8579_v9 = vld [vmem:[%s11342_s1 + $0x230] sm:$0xff]   ;;  %v8580_v10 = vld [vmem:[%s11342_s1 + $0x1d8] sm:$0xff]  }
  0x26   : > { %7722 = vmatprep.subr.bf16.mxu0 %v8540_v35  ;;  %v8581_v11 = vld [vmem:[%s11342_s1 + $0x198] sm:$0xff]   ;;  %v8584_v14 = vld [vmem:[%s11342_s1 + $0x1e0] sm:$0xff]   ;;  %v8591_v20 = vld [vmem:[%s11342_s1 + $0x1e8] sm:$0xff]  }
  0x27   : > { %7679 = vmatpush3.bf16.msra.mxu1 %v8520_v19  ;;  %v8582_v12 = vld [vmem:[%s11342_s1 + $0x278] sm:$0xff]   ;;  %v8585_v15 = vld [vmem:[%s11342_s1 + $0x1a0] sm:$0xff]   ;;  %v8593_v22 = vld [vmem:[%s11342_s1 + $0x348] sm:$0xff]  }
  0x28   : > { %7680 = vmatprep.subr.bf16.mxu1 %v8523_v21  ;;  %v8583_v13 = vld [vmem:[%s11342_s1 + $0x238] sm:$0xff]   ;;  %v8586_v16 = vld [vmem:[%s9413_s17 + $0x20] ss:$296 sps:$4 sm:$0xff]   ;;  %v8588_v17 = vld [vmem:[%s9413_s17 + $0x24] ss:$296 sps:$4 sm:$0xff]  }
  0x29   : > { %7723 = vmatpush3.bf16.msra.mxu0 %v8541_v36  ;;  %v8589_v18 = vld [vmem:[%s11342_s1 + $0x340] sm:$0xff]   ;;  %v8592_v21 = vld [vmem:[%s11342_s1 + $0x1a8] sm:$0xff]   ;;  %v8598_v27 = vld [vmem:[%s11342_s1 + $0x310] sm:$0xff]  }
  0x2a   : > { %7724 = vmatprep.subr.bf16.mxu0 %v8544_v39  ;;  %v8590_v19 = vld [vmem:[%s11342_s1 + $0x300] sm:$0xff]   ;;  %v8594_v23 = vld [vmem:[%s11342_s1 + $0x308] sm:$0xff]   ;;  %v8599_v28 = vld [vmem:[%s11342_s1 + $0x1f8] sm:$0xff]  }
  0x2b   : > { %7681 = vmatpush3.bf16.msra.mxu1 %v8524_v24  ;;  %v8595_v24 = vld [vmem:[%s11342_s1 + $0x1f0] sm:$0xff]   ;;  %v8602_v31 = vld [vmem:[%s9413_s17 + $0x18] ss:$296 sps:$4 sm:$0xff]   ;;  %v8604_v32 = vld [vmem:[%s9413_s17 + $0x1c] ss:$296 sps:$4 sm:$0xff]  }
  0x2c   : > { %7688 = vmatprep.subr.bf16.mxu1 %v8530_v25  ;;  %v8596_v25 = vld [vmem:[%s11342_s1 + $0x1b0] sm:$0xff]   ;;  %v8607_v35 = vld [vmem:[%s11342_s1 + $0x280] sm:$0xff]   ;;  %v8611_v39 = vld [vmem:[%s11342_s1 + $0x288] sm:$0xff]  }
  0x2d   : > { %7725 = vmatpush3.bf16.msra.mxu0 %v8545_v40  ;;  %v8608_v36 = vld [vmem:[%s11342_s1 + $0x360] sm:$0xff]   ;;  %v8612_v40 = vld [vmem:[%s11342_s1 + $0x368] sm:$0xff]   ;;  %v8616_v44 = vld [vmem:[%s11342_s1 + $0x370] sm:$0xff]  }
  0x2e   : > { %5415 = vmatmul.mubr.bf16.vlgmr.msra.gmra.mrb[0].mxu1 %v8526_v26  ;;  %7754 = vmatprep.subr.bf16.mxu0 %v8551_v45  ;;  %v8597_v26 = vld [vmem:[%s11342_s1 + $0x350] sm:$0xff]  }
  0x2f   : > { %7689 = vmatpush3.bf16.msra.mxu1 %v8531_v29  ;;  %5455 = vmatprep.mubr.bf16.mxu1 %v8566_v59  ;;  %v8600_v29 = vld [vmem:[%s11342_s1 + $0x1b8] sm:$0xff]   ;;  %v8617_v45 = vld [vmem:[%s11342_s1 + $0x330] sm:$0xff]   ;;  %v8632_v59 = vld [vmem:[%s11342_s1 + $0x408] sm:$0xff]  }
  0x30   : > { %7690 = vmatprep.subr.bf16.mxu1 %v8534_v30  ;;  %5497 = vmatmul.mubr.bf16.vlgmr.msra.gmra.mrb[0].mxu0 %v8548_v43  ;;  %v8601_v30 = vld [vmem:[%s11342_s1 + $0x358] sm:$0xff]   ;;  %v8615_v43 = vld [vmem:[%s11342_s1 + $0x290] sm:$0xff]  }
  0x31   : > { %7755 = vmatpush3.bf16.msra.mxu0 %v8552_v46  ;;  %5578 = vmatprep.mubr.bf16.mxu0 %v8588_v17  ;;  %v8618_v46 = vld [vmem:[%s11342_s1 + $0x2d8] sm:$0xff]   ;;  %v8655_v17 = vld [vmem:[%s11342_s1 + $0x430] sm:$0xff]  }
  0x32   : > { %7756 = vmatprep.subr.bf16.mxu0 %v8555_v49  ;;  %v8621_v49 = vld [vmem:[%s11342_s1 + $0x338] sm:$0xff]  }
  0x33   : > { %7691 = vmatpush3.bf16.msra.mxu1 %v8535_v33  ;;  %v8605_v33 = vld [vmem:[%s11342_s1 + $0x318] sm:$0xff]  }
  0x34   : > { %7692 = vmatprep.subr.bf16.mxu1 %v8538_v34  ;;  %v8606_v34 = vld [vmem:[%s11342_s1 + $0x2c0] sm:$0xff]  }
  0x35   : > { %7757 = vmatpush3.bf16.msra.mxu0 %v8556_v50  ;;  %v8622_v50 = vld [vmem:[%s11342_s1 + $0x2e0] sm:$0xff]  }
  0x36   : > { %7758 = vmatprep.subr.bf16.mxu0 %v8559_v53  ;;  %v8626_v53 = vld [vmem:[%s9413_s17 + $0x34] ss:$296 sps:$4 sm:$0xff]  }
  0x37   : > { %7693 = vmatpush3.bf16.msra.mxu1 %v8539_v37  ;;  %v8609_v37 = vld [vmem:[%s11342_s1 + $0x320] sm:$0xff]  }
  0x38   : > { %7694 = vmatprep.subr.bf16.mxu1 %v8542_v38  ;;  %v8610_v38 = vld [vmem:[%s11342_s1 + $0x2c8] sm:$0xff]  }
  0x39   : > { %7759 = vmatpush3.bf16.msra.mxu0 %v8560_v54  ;;  %v8627_v54 = vld [vmem:[%s11342_s1 + $0x440] sm:$0xff]  }
  0x3a   : > { %7760 = vmatprep.subr.bf16.mxu0 %v8563_v57  ;;  %v8630_v57 = vld [vmem:[%s11342_s1 + $0x2a8] sm:$0xff]  }
  0x3b   : > { %7695 = vmatpush3.bf16.msra.mxu1 %v8543_v41  ;;  %v8613_v41 = vld [vmem:[%s11342_s1 + $0x328] sm:$0xff]  }
  0x3c   : > { %7696 = vmatprep.subr.bf16.mxu1 %v8546_v42  ;;  %v8614_v42 = vld [vmem:[%s11342_s1 + $0x2d0] sm:$0xff]  }
  0x3d   : > { %7761 = vmatpush3.bf16.msra.mxu0 %v8567_v60  ;;  %v8633_v60 = vld [vmem:[%s11342_s1 + $0x2f0] sm:$0xff]  }
  0x3e   : > { %7762 = vmatprep.subr.bf16.mxu0 %v8570_v0  ;;  %v8637_v0 = vld [vmem:[%s11342_s1 + $0x2f8] sm:$0xff]  }
  0x3f   : > { %7697 = vmatpush3.bf16.msra.mxu1 %v8547_v47  ;;  %v8619_v47 = vld [vmem:[%s11342_s1 + $0x298] sm:$0xff]  }
  0x40   : > { %7698 = vmatprep.subr.bf16.mxu1 %v8553_v48  ;;  %v8620_v48 = vld [vmem:[%s11342_s1 + $0x378] sm:$0xff]  }
  0x41   : > { %7763 = vmatpush3.bf16.msra.mxu0 %v8571_v1  ;;  %v8638_v1 = vld [vmem:[%s11342_s1 + $0x2b8] sm:$0xff]  }
  0x42   : > { %7764 = vmatprep.subr.bf16.mxu0 %v8574_v4  ;;  %v8642_v4 = vld [vmem:[%s9413_s17 + $0x2c] ss:$296 sps:$4 sm:$0xff]  }
  0x43   : > { %7699 = vmatpush3.bf16.msra.mxu1 %v8554_v51  ;;  %v8623_v51 = vld [vmem:[%s11342_s1 + $0x2a0] sm:$0xff]  }
  0x44   : > { %7700 = vmatprep.subr.bf16.mxu1 %v8557_v52  ;;  %v8624_v52 = vld [vmem:[%s9413_s17 + $0x30] ss:$296 sps:$4 sm:$0xff]  }
  0x45   : > { %7765 = vmatpush3.bf16.msra.mxu0 %v8575_v5  ;;  %v8643_v5 = vld [vmem:[%s11342_s1 + $0x418] sm:$0xff]  }
  0x46   : > { %7766 = vmatprep.subr.bf16.mxu0 %v8578_v8  ;;  %v8646_v8 = vld [vmem:[%s11342_s1 + $0x460] sm:$0xff]  }
  0x47   : > { %7701 = vmatpush3.bf16.msra.mxu1 %v8558_v55  ;;  %v8628_v55 = vld [vmem:[%s11342_s1 + $0x400] sm:$0xff]  }
  0x48   : > { %7702 = vmatprep.subr.bf16.mxu1 %v8561_v56  ;;  %v8629_v56 = vld [vmem:[%s11342_s1 + $0x2e8] sm:$0xff]  }
  0x49   : > { %7767 = vmatpush3.bf16.msra.mxu0 %v8579_v9  ;;  %v8647_v9 = vld [vmem:[%s11342_s1 + $0x420] sm:$0xff]  }
  0x4a   : > { %7768 = vmatprep.subr.bf16.mxu0 %v8582_v12  ;;  %v8650_v12 = vld [vmem:[%s11342_s1 + $0x468] sm:$0xff]  }
  0x4b   : > { %7703 = vmatpush3.bf16.msra.mxu1 %v8562_v58  ;;  %v8631_v58 = vld [vmem:[%s11342_s1 + $0x448] sm:$0xff]  }
  0x4c   : > { %7732 = vmatprep.subr.bf16.mxu1 %v8568_v62  ;;  %v8635_v62 = vld [vmem:[%s11342_s1 + $0x450] sm:$0xff]  }
  0x4d   : > { %7769 = vmatpush3.bf16.msra.mxu0 %v8583_v13  ;;  %v8651_v13 = vld [vmem:[%s11342_s1 + $0x428] sm:$0xff]  }
  0x4e   : > { %5456 = vmatmul.mubr.bf16.vlgmr.msra.gmra.mrb[4].mxu1 %v8564_v61  ;;  %7798 = vmatprep.subr.bf16.mxu0 %v8589_v18  ;;  %v8634_v61 = vld [vmem:[%s11342_s1 + $0x2b0] sm:$0xff]   ;;  %v8656_v18 = vld [vmem:[%s11342_s1 + $0x3d8] sm:$0xff]  }
  0x4f   : > { %7733 = vmatpush3.bf16.msra.mxu1 %v8569_v63  ;;  %5537 = vmatprep.mubr.bf16.mxu1 %v8604_v32  ;;  %v8636_v63 = vld [vmem:[%s11342_s1 + $0x410] sm:$0xff]  }
  0x50   : > { %7734 = vmatprep.subr.bf16.mxu1 %v8572_v2  ;;  %5579 = vmatmul.mubr.bf16.vlgmr.msra.gmra.mrb[4].mxu0 %v8586_v16  ;;  %v8639_v2 = vld [vmem:[%s11342_s1 + $0x458] sm:$0xff]   ;;  %v8654_v16 = vld [vmem:[%s11342_s1 + $0x470] sm:$0xff]  }
  0x51   : > { %7799 = vmatpush3.bf16.msra.mxu0 %v8590_v19  ;;  %5660 = vmatprep.mubr.bf16.mxu0 %v8626_v53  ;;  %v8657_v19 = vld [vmem:[%s11342_s1 + $0x398] sm:$0xff]   ;;  %v8671_v32 = vld [vmem:[%s11342_s1 + $0x3f0] sm:$0xff]  }
  0x52   : > { %7800 = vmatprep.subr.bf16.mxu0 %v8593_v22  ;;  %v8660_v22 = vld [vmem:[%s11342_s1 + $0x3e0] sm:$0xff]   ;;  %v8693_v53 = vld [vmem:[%s11342_s1 + $0x530] sm:$0xff]  }
  0x53   : > { %7735 = vmatpush3.bf16.msra.mxu1 %v8573_v3  ;;  %v8640_v3 = vld [vmem:[%s9413_s17 + $0x28] ss:$296 sps:$4 sm:$0xff]  }
  0x54   : > { %7736 = vmatprep.subr.bf16.mxu1 %v8576_v6  ;;  %v8644_v6 = vld [vmem:[%s11342_s1 + $0x3c0] sm:$0xff]  }
  0x55   : > { %7801 = vmatpush3.bf16.msra.mxu0 %v8594_v23  ;;  %v8661_v23 = vld [vmem:[%s11342_s1 + $0x3a0] sm:$0xff]  }
  0x56   : > { %7802 = vmatprep.subr.bf16.mxu0 %v8597_v26  ;;  %v8665_v26 = vld [vmem:[%s11342_s1 + $0x540] sm:$0xff]  }
  0x57   : > { %7737 = vmatpush3.bf16.msra.mxu1 %v8577_v7  ;;  %v8645_v7 = vld [vmem:[%s11342_s1 + $0x380] sm:$0xff]  }
  0x58   : > { %7738 = vmatprep.subr.bf16.mxu1 %v8580_v10  ;;  %v8648_v10 = vld [vmem:[%s11342_s1 + $0x3c8] sm:$0xff]  }
  0x59   : > { %7803 = vmatpush3.bf16.msra.mxu0 %v8598_v27  ;;  %v8666_v27 = vld [vmem:[%s11342_s1 + $0x500] sm:$0xff]  }
  0x5a   : > { %7804 = vmatprep.subr.bf16.mxu0 %v8601_v30  ;;  %v8669_v30 = vld [vmem:[%s11342_s1 + $0x548] sm:$0xff]  }
  0x5b   : > { %7739 = vmatpush3.bf16.msra.mxu1 %v8581_v11  ;;  %v8649_v11 = vld [vmem:[%s11342_s1 + $0x388] sm:$0xff]  }
  0x5c   : > { %7740 = vmatprep.subr.bf16.mxu1 %v8584_v14  ;;  %v8652_v14 = vld [vmem:[%s11342_s1 + $0x3d0] sm:$0xff]  }
  0x5d   : > { %7805 = vmatpush3.bf16.msra.mxu0 %v8605_v33  ;;  %v8672_v33 = vld [vmem:[%s11342_s1 + $0x3b0] sm:$0xff]  }
  0x5e   : > { %7806 = vmatprep.subr.bf16.mxu0 %v8608_v36  ;;  %v8675_v36 = vld [vmem:[%s11342_s1 + $0x3f8] sm:$0xff]  }
  0x5f   : > { %7741 = vmatpush3.bf16.msra.mxu1 %v8585_v15  ;;  %v8653_v15 = vld [vmem:[%s11342_s1 + $0x390] sm:$0xff]  }
  0x60   : > { %7742 = vmatprep.subr.bf16.mxu1 %v8591_v20  ;;  %v8658_v20 = vld [vmem:[%s11342_s1 + $0x478] sm:$0xff]  }
  0x61   : > { %7807 = vmatpush3.bf16.msra.mxu0 %v8609_v37  ;;  %v8676_v37 = vld [vmem:[%s11342_s1 + $0x3b8] sm:$0xff]  }
  0x62   : > { %7808 = vmatprep.subr.bf16.mxu0 %v8612_v40  ;;  %v8680_v40 = vld [vmem:[%s9413_s17 + $0x3c] ss:$296 sps:$4 sm:$0xff]  }
  0x63   : > { %7743 = vmatpush3.bf16.msra.mxu1 %v8592_v21  ;;  %v8659_v21 = vld [vmem:[%s11342_s1 + $0x438] sm:$0xff]  }
  0x64   : > { %7744 = vmatprep.subr.bf16.mxu1 %v8595_v24  ;;  %v8662_v24 = vld [vmem:[%s9413_s17 + $0x40] ss:$296 sps:$4 sm:$0xff]  }
  0x65   : > { %7809 = vmatpush3.bf16.msra.mxu0 %v8613_v41  ;;  %v8681_v41 = vld [vmem:[%s11342_s1 + $0x518] sm:$0xff]  }
  0x66   : > { %7810 = vmatprep.subr.bf16.mxu0 %v8616_v44  ;;  %v8684_v44 = vld [vmem:[%s11342_s1 + $0x560] sm:$0xff]  }
  0x67   : > { %7745 = vmatpush3.bf16.msra.mxu1 %v8596_v25  ;;  %v8664_v25 = vld [vmem:[%s9413_s17 + $0x44] ss:$296 sps:$4 sm:$0xff]  }
  0x68   : > { %7746 = vmatprep.subr.bf16.mxu1 %v8599_v28  ;;  %v8667_v28 = vld [vmem:[%s11342_s1 + $0x3e8] sm:$0xff]  }
  0x69   : > { %7811 = vmatpush3.bf16.msra.mxu0 %v8617_v45  ;;  %v8685_v45 = vld [vmem:[%s11342_s1 + $0x520] sm:$0xff]  }
  0x6a   : > { %7812 = vmatprep.subr.bf16.mxu0 %v8620_v48  ;;  %v8688_v48 = vld [vmem:[%s11342_s1 + $0x568] sm:$0xff]  }
  0x6b   : > { %7747 = vmatpush3.bf16.msra.mxu1 %v8600_v29  ;;  %v8668_v29 = vld [vmem:[%s11342_s1 + $0x3a8] sm:$0xff]  }
  0x6c   : > { %7776 = vmatprep.subr.bf16.mxu1 %v8606_v34  ;;  %v8673_v34 = vld [vmem:[%s11342_s1 + $0x550] sm:$0xff]  }
  0x6d   : > { %7813 = vmatpush3.bf16.msra.mxu0 %v8621_v49  ;;  %v8689_v49 = vld [vmem:[%s11342_s1 + $0x528] sm:$0xff]  }
  0x6e   : > { %5538 = vmatmul.mubr.bf16.vlgmr.msra.gmra.mrb[8].mxu1 %v8602_v31  ;;  %7842 = vmatprep.subr.bf16.mxu0 %v8627_v54  ;;  %v8670_v31 = vld [vmem:[%s11342_s1 + $0x508] sm:$0xff]   ;;  %v8694_v54 = vld [vmem:[%s11342_s1 + $0x4d8] sm:$0xff]  }
  0x6f   : > { %7777 = vmatpush3.bf16.msra.mxu1 %v8607_v35  ;;  %5619 = vmatprep.mubr.bf16.mxu1 %v8642_v4  ;;  %v8674_v35 = vld [vmem:[%s11342_s1 + $0x510] sm:$0xff]  }
  0x70   : > { %7778 = vmatprep.subr.bf16.mxu1 %v8610_v38  ;;  %5661 = vmatmul.mubr.bf16.vlgmr.msra.gmra.mrb[8].mxu0 %v8624_v52  ;;  %v8677_v38 = vld [vmem:[%s11342_s1 + $0x558] sm:$0xff]   ;;  %v8692_v52 = vld [vmem:[%s11342_s1 + $0x570] sm:$0xff]  }
  0x71   : > { %7843 = vmatpush3.bf16.msra.mxu0 %v8628_v55  ;;  %5742 = vmatprep.mubr.bf16.mxu0 %v8664_v25  ;;  %v8695_v55 = vld [vmem:[%s11342_s1 + $0x498] sm:$0xff]   ;;  %v8709_v4 = vld [vmem:[%s11342_s1 + $0x4f0] sm:$0xff]  }
  0x72   : > { %7844 = vmatprep.subr.bf16.mxu0 %v8631_v58  ;;  %v8698_v58 = vld [vmem:[%s11342_s1 + $0x4e0] sm:$0xff]   ;;  %v8731_v25 = vld [vmem:[%s11342_s1 + $0x630] sm:$0xff]  }
  0x73   : > { %7779 = vmatpush3.bf16.msra.mxu1 %v8611_v39  ;;  %v8678_v39 = vld [vmem:[%s9413_s17 + $0x38] ss:$296 sps:$4 sm:$0xff]  }
  0x74   : > { %7780 = vmatprep.subr.bf16.mxu1 %v8614_v42  ;;  %v8682_v42 = vld [vmem:[%s11342_s1 + $0x4c0] sm:$0xff]  }
  0x75   : > { %7845 = vmatpush3.bf16.msra.mxu0 %v8632_v59  ;;  %v8699_v59 = vld [vmem:[%s11342_s1 + $0x4a0] sm:$0xff]  }
  0x76   : > { %7846 = vmatprep.subr.bf16.mxu0 %v8635_v62  ;;  %v8703_v62 = vld [vmem:[%s11342_s1 + $0x640] sm:$0xff]  }
  0x77   : > { %7781 = vmatpush3.bf16.msra.mxu1 %v8615_v43  ;;  %v8683_v43 = vld [vmem:[%s11342_s1 + $0x480] sm:$0xff]  }
  0x78   : > { %7782 = vmatprep.subr.bf16.mxu1 %v8618_v46  ;;  %v8686_v46 = vld [vmem:[%s11342_s1 + $0x4c8] sm:$0xff]  }
  0x79   : > { %7847 = vmatpush3.bf16.msra.mxu0 %v8636_v63  ;;  %v8704_v63 = vld [vmem:[%s11342_s1 + $0x600] sm:$0xff]  }
  0x7a   : > { %7848 = vmatprep.subr.bf16.mxu0 %v8639_v2  ;;  %v8707_v2 = vld [vmem:[%s11342_s1 + $0x648] sm:$0xff]  }
  0x7b   : > { %7783 = vmatpush3.bf16.msra.mxu1 %v8619_v47  ;;  %v8687_v47 = vld [vmem:[%s11342_s1 + $0x488] sm:$0xff]  }
  0x7c   : > { %7784 = vmatprep.subr.bf16.mxu1 %v8622_v50  ;;  %v8690_v50 = vld [vmem:[%s11342_s1 + $0x4d0] sm:$0xff]  }
  0x7d   : > { %7849 = vmatpush3.bf16.msra.mxu0 %v8643_v5  ;;  %v8710_v5 = vld [vmem:[%s11342_s1 + $0x4b0] sm:$0xff]  }
  0x7e   : > { %7850 = vmatprep.subr.bf16.mxu0 %v8646_v8  ;;  %v8713_v8 = vld [vmem:[%s11342_s1 + $0x4f8] sm:$0xff]  }
  0x7f   : > { %7785 = vmatpush3.bf16.msra.mxu1 %v8623_v51  ;;  %v8691_v51 = vld [vmem:[%s11342_s1 + $0x490] sm:$0xff]  }
  0x80   : > { %7786 = vmatprep.subr.bf16.mxu1 %v8629_v56  ;;  %v8696_v56 = vld [vmem:[%s11342_s1 + $0x578] sm:$0xff]  }
  0x81   : > { %7851 = vmatpush3.bf16.msra.mxu0 %v8647_v9  ;;  %v8714_v9 = vld [vmem:[%s11342_s1 + $0x4b8] sm:$0xff]  }
  0x82   : > { %7852 = vmatprep.subr.bf16.mxu0 %v8650_v12  ;;  %v8718_v12 = vld [vmem:[%s9413_s17 + $0x4c] ss:$296 sps:$4 sm:$0xff]  }
  0x83   : > { %7787 = vmatpush3.bf16.msra.mxu1 %v8630_v57  ;;  %v8697_v57 = vld [vmem:[%s11342_s1 + $0x538] sm:$0xff]  }
  0x84   : > { %7788 = vmatprep.subr.bf16.mxu1 %v8633_v60  ;;  %v8700_v60 = vld [vmem:[%s9413_s17 + $0x50] ss:$296 sps:$4 sm:$0xff]  }
  0x85   : > { %7853 = vmatpush3.bf16.msra.mxu0 %v8651_v13  ;;  %v8719_v13 = vld [vmem:[%s11342_s1 + $0x618] sm:$0xff]  }
  0x86   : > { %7854 = vmatprep.subr.bf16.mxu0 %v8654_v16  ;;  %v8722_v16 = vld [vmem:[%s11342_s1 + $0x660] sm:$0xff]  }
  0x87   : > { %7789 = vmatpush3.bf16.msra.mxu1 %v8634_v61  ;;  %v8702_v61 = vld [vmem:[%s9413_s17 + $0x54] ss:$296 sps:$4 sm:$0xff]  }
  0x88   : > { %7790 = vmatprep.subr.bf16.mxu1 %v8637_v0  ;;  %v8705_v0 = vld [vmem:[%s11342_s1 + $0x4e8] sm:$0xff]  }
  0x89   : > { %7855 = vmatpush3.bf16.msra.mxu0 %v8655_v17  ;;  %v8723_v17 = vld [vmem:[%s11342_s1 + $0x620] sm:$0xff]  }
  0x8a   : > { %7856 = vmatprep.subr.bf16.mxu0 %v8658_v20  ;;  %v8726_v20 = vld [vmem:[%s11342_s1 + $0x668] sm:$0xff]  }
  0x8b   : > { %7791 = vmatpush3.bf16.msra.mxu1 %v8638_v1  ;;  %v8706_v1 = vld [vmem:[%s11342_s1 + $0x4a8] sm:$0xff]  }
  0x8c   : > { %7820 = vmatprep.subr.bf16.mxu1 %v8644_v6  ;;  %v8711_v6 = vld [vmem:[%s11342_s1 + $0x650] sm:$0xff]  }
  0x8d   : > { %7857 = vmatpush3.bf16.msra.mxu0 %v8659_v21  ;;  %v8727_v21 = vld [vmem:[%s11342_s1 + $0x628] sm:$0xff]  }
  0x8e   : > { %5620 = vmatmul.mubr.bf16.vlgmr.msra.gmra.mrb[12].mxu1 %v8640_v3  ;;  %7886 = vmatprep.subr.bf16.mxu0 %v8665_v26  ;;  %v8708_v3 = vld [vmem:[%s11342_s1 + $0x608] sm:$0xff]   ;;  %v8732_v26 = vld [vmem:[%s11342_s1 + $0x5d8] sm:$0xff]  }
  0x8f   : > { %7821 = vmatpush3.bf16.msra.mxu1 %v8645_v7  ;;  %5701 = vmatprep.mubr.bf16.mxu1 %v8680_v40  ;;  %v8712_v7 = vld [vmem:[%s11342_s1 + $0x610] sm:$0xff]  }
  0x90   : > { %7822 = vmatprep.subr.bf16.mxu1 %v8648_v10  ;;  %5743 = vmatmul.mubr.bf16.vlgmr.msra.gmra.mrb[12].mxu0 %v8662_v24  ;;  %v8715_v10 = vld [vmem:[%s11342_s1 + $0x658] sm:$0xff]   ;;  %v8730_v24 = vld [vmem:[%s11342_s1 + $0x670] sm:$0xff]  }
  0x91   : > { %7887 = vmatpush3.bf16.msra.mxu0 %v8666_v27  ;;  %5824 = vmatprep.mubr.bf16.mxu0 %v8702_v61  ;;  %v8733_v27 = vld [vmem:[%s11342_s1 + $0x598] sm:$0xff]   ;;  %v8747_v40 = vld [vmem:[%s11342_s1 + $0x5f0] sm:$0xff]  }
  0x92   : > { %7888 = vmatprep.subr.bf16.mxu0 %v8669_v30  ;;  %v8736_v30 = vld [vmem:[%s11342_s1 + $0x5e0] sm:$0xff]   ;;  %v8769_v61 = vld [vmem:[%s11342_s1 + $0x730] sm:$0xff]  }
  0x93   : > { %7823 = vmatpush3.bf16.msra.mxu1 %v8649_v11  ;;  %v8716_v11 = vld [vmem:[%s9413_s17 + $0x48] ss:$296 sps:$4 sm:$0xff]  }
  0x94   : > { %7824 = vmatprep.subr.bf16.mxu1 %v8652_v14  ;;  %v8720_v14 = vld [vmem:[%s11342_s1 + $0x5c0] sm:$0xff]  }
  0x95   : > { %7889 = vmatpush3.bf16.msra.mxu0 %v8670_v31  ;;  %v8737_v31 = vld [vmem:[%s11342_s1 + $0x5a0] sm:$0xff]  }
  0x96   : > { %7890 = vmatprep.subr.bf16.mxu0 %v8673_v34  ;;  %v8741_v34 = vld [vmem:[%s11342_s1 + $0x740] sm:$0xff]  }
  0x97   : > { %7825 = vmatpush3.bf16.msra.mxu1 %v8653_v15  ;;  %v8721_v15 = vld [vmem:[%s11342_s1 + $0x580] sm:$0xff]  }
  0x98   : > { %7826 = vmatprep.subr.bf16.mxu1 %v8656_v18  ;;  %v8724_v18 = vld [vmem:[%s11342_s1 + $0x5c8] sm:$0xff]  }
  0x99   : > { %7891 = vmatpush3.bf16.msra.mxu0 %v8674_v35  ;;  %v8742_v35 = vld [vmem:[%s11342_s1 + $0x700] sm:$0xff]  }
  0x9a   : > { %7892 = vmatprep.subr.bf16.mxu0 %v8677_v38  ;;  %v8745_v38 = vld [vmem:[%s11342_s1 + $0x748] sm:$0xff]  }
  0x9b   : > { %7827 = vmatpush3.bf16.msra.mxu1 %v8657_v19  ;;  %v8725_v19 = vld [vmem:[%s11342_s1 + $0x588] sm:$0xff]  }
  0x9c   : > { %7828 = vmatprep.subr.bf16.mxu1 %v8660_v22  ;;  %v8728_v22 = vld [vmem:[%s11342_s1 + $0x5d0] sm:$0xff]  }
  0x9d   : > { %7893 = vmatpush3.bf16.msra.mxu0 %v8681_v41  ;;  %v8748_v41 = vld [vmem:[%s11342_s1 + $0x5b0] sm:$0xff]  }
  0x9e   : > { %7894 = vmatprep.subr.bf16.mxu0 %v8684_v44  ;;  %v8751_v44 = vld [vmem:[%s11342_s1 + $0x5f8] sm:$0xff]  }
  0x9f   : > { %7829 = vmatpush3.bf16.msra.mxu1 %v8661_v23  ;;  %v8729_v23 = vld [vmem:[%s11342_s1 + $0x590] sm:$0xff]  }
  0xa0   : > { %7830 = vmatprep.subr.bf16.mxu1 %v8667_v28  ;;  %v8734_v28 = vld [vmem:[%s11342_s1 + $0x678] sm:$0xff]  }
  0xa1   : > { %7895 = vmatpush3.bf16.msra.mxu0 %v8685_v45  ;;  %v8752_v45 = vld [vmem:[%s11342_s1 + $0x5b8] sm:$0xff]  }
  0xa2   : > { %7896 = vmatprep.subr.bf16.mxu0 %v8688_v48  ;;  %v8756_v48 = vld [vmem:[%s9413_s17 + $0x5c] ss:$296 sps:$4 sm:$0xff]  }
  0xa3   : > { %7831 = vmatpush3.bf16.msra.mxu1 %v8668_v29  ;;  %v8735_v29 = vld [vmem:[%s11342_s1 + $0x638] sm:$0xff]  }
  0xa4   : > { %7832 = vmatprep.subr.bf16.mxu1 %v8671_v32  ;;  %v8738_v32 = vld [vmem:[%s9413_s17 + $0x60] ss:$296 sps:$4 sm:$0xff]  }
  0xa5   : > { %7897 = vmatpush3.bf16.msra.mxu0 %v8689_v49  ;;  %v8757_v49 = vld [vmem:[%s11342_s1 + $0x718] sm:$0xff]  }
  0xa6   : > { %7898 = vmatprep.subr.bf16.mxu0 %v8692_v52  ;;  %v8760_v52 = vld [vmem:[%s11342_s1 + $0x760] sm:$0xff]  }
  0xa7   : > { %7833 = vmatpush3.bf16.msra.mxu1 %v8672_v33  ;;  %v8740_v33 = vld [vmem:[%s9413_s17 + $0x64] ss:$296 sps:$4 sm:$0xff]  }
  0xa8   : > { %7834 = vmatprep.subr.bf16.mxu1 %v8675_v36  ;;  %v8743_v36 = vld [vmem:[%s11342_s1 + $0x5e8] sm:$0xff]  }
  0xa9   : > { %7899 = vmatpush3.bf16.msra.mxu0 %v8693_v53  ;;  %v8761_v53 = vld [vmem:[%s11342_s1 + $0x720] sm:$0xff]  }
  0xaa   : > { %7900 = vmatprep.subr.bf16.mxu0 %v8696_v56  ;;  %v8764_v56 = vld [vmem:[%s11342_s1 + $0x768] sm:$0xff]  }
  0xab   : > { %7835 = vmatpush3.bf16.msra.mxu1 %v8676_v37  ;;  %v8744_v37 = vld [vmem:[%s11342_s1 + $0x5a8] sm:$0xff]  }
  0xac   : > { %7864 = vmatprep.subr.bf16.mxu1 %v8682_v42  ;;  %v8749_v42 = vld [vmem:[%s11342_s1 + $0x750] sm:$0xff]  }
  0xad   : > { %7901 = vmatpush3.bf16.msra.mxu0 %v8697_v57  ;;  %v8765_v57 = vld [vmem:[%s11342_s1 + $0x728] sm:$0xff]  }
  0xae   : > { %5702 = vmatmul.mubr.bf16.vlgmr.msra.gmra.mrb[16].mxu1 %v8678_v39  ;;  %7930 = vmatprep.subr.bf16.mxu0 %v8703_v62  ;;  %v8746_v39 = vld [vmem:[%s11342_s1 + $0x708] sm:$0xff]  }
  0xaf   : > { %7865 = vmatpush3.bf16.msra.mxu1 %v8683_v43  ;;  %5783 = vmatprep.mubr.bf16.mxu1 %v8718_v12  ;;  %v8750_v43 = vld [vmem:[%s11342_s1 + $0x710] sm:$0xff]   ;;  %v8779_v12 = vld [vmem:[%s11342_s1 + $0x840] sm:$0xff]  }
  0xb0   : > { %7866 = vmatprep.subr.bf16.mxu1 %v8686_v46  ;;  %5825 = vmatmul.mubr.bf16.vlgmr.msra.gmra.mrb[16].mxu0 %v8700_v60  ;;  %v8753_v46 = vld [vmem:[%s11342_s1 + $0x758] sm:$0xff]   ;;  %v8768_v60 = vld [vmem:[%s11342_s1 + $0x770] sm:$0xff]  }
  0xb1   : > { %7931 = vmatpush3.bf16.msra.mxu0 %v8704_v63  ;;  %5906 = vmatprep.mubr.bf16.mxu0 %v8740_v33  ;;  %v8770_v63 = vld [vmem:[%s11342_s1 + $0x6d8] sm:$0xff]  }
  0xb2   : > { %7932 = vmatprep.subr.bf16.mxu0 %v8707_v2  ;;  %v8795_v33 = vld [vmem:[%s11342_s1 + $0x818] sm:$0xff]  }
  0xb3   : > { %7867 = vmatpush3.bf16.msra.mxu1 %v8687_v47  ;;  %v8754_v47 = vld [vmem:[%s9413_s17 + $0x58] ss:$296 sps:$4 sm:$0xff]  }
  0xb4   : > { %7868 = vmatprep.subr.bf16.mxu1 %v8690_v50  ;;  %v8758_v50 = vld [vmem:[%s11342_s1 + $0x6c0] sm:$0xff]  }
  0xb5   : > { %7933 = vmatpush3.bf16.msra.mxu0 %v8708_v3 }
  0xb6   : > { %7934 = vmatprep.subr.bf16.mxu0 %v8711_v6  ;;  %v8773_v6 = vld [vmem:[%s11342_s1 + $0x738] sm:$0xff]  }
  0xb7   : > { %7869 = vmatpush3.bf16.msra.mxu1 %v8691_v51  ;;  %v8759_v51 = vld [vmem:[%s11342_s1 + $0x680] sm:$0xff]  }
  0xb8   : > { %7870 = vmatprep.subr.bf16.mxu1 %v8694_v54  ;;  %v8762_v54 = vld [vmem:[%s11342_s1 + $0x6c8] sm:$0xff]  }
  0xb9   : > { %7935 = vmatpush3.bf16.msra.mxu0 %v8712_v7 }
  0xba   : > { %7936 = vmatprep.subr.bf16.mxu0 %v8715_v10  ;;  %v8776_v10 = vld [vmem:[%s9413_s17 + $0x70] ss:$296 sps:$4 sm:$0xff]  }
  0xbb   : > { %7871 = vmatpush3.bf16.msra.mxu1 %v8695_v55  ;;  %v8763_v55 = vld [vmem:[%s11342_s1 + $0x688] sm:$0xff]  }
  0xbc   : > { %7872 = vmatprep.subr.bf16.mxu1 %v8698_v58  ;;  %v8766_v58 = vld [vmem:[%s11342_s1 + $0x6d0] sm:$0xff]  }
  0xbd   : > { %7937 = vmatpush3.bf16.msra.mxu0 %v8719_v13  ;;  %v8780_v13 = vld [vmem:[%s11342_s1 + $0x800] sm:$0xff]  }
  0xbe   : > { %7938 = vmatprep.subr.bf16.mxu0 %v8722_v16  ;;  %v8783_v16 = vld [vmem:[%s11342_s1 + $0x848] sm:$0xff]  }
  0xbf   : > { %7873 = vmatpush3.bf16.msra.mxu1 %v8699_v59  ;;  %v8767_v59 = vld [vmem:[%s11342_s1 + $0x690] sm:$0xff]  }
  0xc0   : > { %7874 = vmatprep.subr.bf16.mxu1 %v8705_v0 }
  0xc1   : > { %7939 = vmatpush3.bf16.msra.mxu0 %v8723_v17  ;;  %v8784_v17 = vld [vmem:[%s11342_s1 + $0x808] sm:$0xff]  }
  0xc2   : > { %7940 = vmatprep.subr.bf16.mxu0 %v8726_v20  ;;  %v8786_v20 = vld [vmem:[%s11342_s1 + $0x6b0] sm:$0xff]  }
  0xc3   : > { %7875 = vmatpush3.bf16.msra.mxu1 %v8706_v1  ;;  %v8771_v1 = vld [vmem:[%s11342_s1 + $0x698] sm:$0xff]  }
  0xc4   : > { %7876 = vmatprep.subr.bf16.mxu1 %v8709_v4  ;;  %v8772_v4 = vld [vmem:[%s11342_s1 + $0x778] sm:$0xff]  }
  0xc5   : > { %7941 = vmatpush3.bf16.msra.mxu0 %v8727_v21 }
  0xc6   : > { %7942 = vmatprep.subr.bf16.mxu0 %v8730_v24 }
  0xc7   : > { %7877 = vmatpush3.bf16.msra.mxu1 %v8710_v5 }
  0xc8   : > { %7878 = vmatprep.subr.bf16.mxu1 %v8713_v8  ;;  %v8774_v8 = vld [vmem:[%s11342_s1 + $0x6e0] sm:$0xff]  }
  0xc9   : > { %7943 = vmatpush3.bf16.msra.mxu0 %v8731_v25  ;;  %v8788_v25 = vld [vmem:[%s11342_s1 + $0x810] sm:$0xff]  }
  0xca   : > { %7944 = vmatprep.subr.bf16.mxu0 %v8734_v28 }
  0xcb   : > { %7879 = vmatpush3.bf16.msra.mxu1 %v8714_v9  ;;  %v8775_v9 = vld [vmem:[%s11342_s1 + $0x6a0] sm:$0xff]  }
  0xcc   : > { %7908 = vmatprep.subr.bf16.mxu1 %v8720_v14  ;;  %v8781_v14 = vld [vmem:[%s11342_s1 + $0x6e8] sm:$0xff]  }
  0xcd   : > { %7945 = vmatpush3.bf16.msra.mxu0 %v8735_v29  ;;  %v8790_v29 = vld [vmem:[%s11342_s1 + $0x6b8] sm:$0xff]  }
  0xce   : > { %5784 = vmatmul.mubr.bf16.vlgmr.msra.gmra.mrb[20].mxu1 %v8716_v11  ;;  %7974 = vmatprep.subr.bf16.mxu0 %v8741_v34  ;;  %v8778_v11 = vld [vmem:[%s9413_s17 + $0x74] ss:$296 sps:$4 sm:$0xff]   ;;  %v8796_v34 = vld [vmem:[%s11342_s1 + $0x7c0] sm:$0xff]  }
  0xcf   : > { %7909 = vmatpush3.bf16.msra.mxu1 %v8721_v15  ;;  %5865 = vmatprep.mubr.bf16.mxu1 %v8756_v48  ;;  %v8782_v15 = vld [vmem:[%s11342_s1 + $0x6a8] sm:$0xff]   ;;  %v8806_v48 = vld [vmem:[%s11342_s1 + $0x870] sm:$0xff]  }
  0xd0   : > { %7910 = vmatprep.subr.bf16.mxu1 %v8724_v18  ;;  %5907 = vmatmul.mubr.bf16.vlgmr.msra.gmra.mrb[20].mxu0 %v8738_v32  ;;  %v8785_v18 = vld [vmem:[%s11342_s1 + $0x6f0] sm:$0xff]  }
  0xd1   : > { %7975 = vmatpush3.bf16.msra.mxu0 %v8742_v35  ;;  %5988 = vmatprep.mubr.bf16.mxu0 %v8778_v11  ;;  %v8794_v32 = vld [vmem:[%s9413_s17 + $0x6c] ss:$296 sps:$4 sm:$0xff]   ;;  %v8797_v35 = vld [vmem:[%s11342_s1 + $0x780] sm:$0xff]  }
  0xd2   : > { %7976 = vmatprep.subr.bf16.mxu0 %v8745_v38  ;;  %v8800_v38 = vld [vmem:[%s11342_s1 + $0x7c8] sm:$0xff]  }
  0xd3   : > { %7911 = vmatpush3.bf16.msra.mxu1 %v8725_v19 }
  0xd4   : > { %7912 = vmatprep.subr.bf16.mxu1 %v8728_v22  ;;  %v8787_v22 = vld [vmem:[%s11342_s1 + $0x850] sm:$0xff]  }
  0xd5   : > { %7977 = vmatpush3.bf16.msra.mxu0 %v8746_v39  ;;  %v6999_v39 = vld [vmem:[%s11343_s2] ss:$0 sm:$0xff] }
  0xd6   : > { %7978 = vmatprep.subr.bf16.mxu0 %v8749_v42  ;;  %v8803_v42 = vld [vmem:[%s11342_s1 + $0x828] sm:$0xff]  }
  0xd7   : > { %7913 = vmatpush3.bf16.msra.mxu1 %v8729_v23 }
  0xd8   : > { %7914 = vmatprep.subr.bf16.mxu1 %v8732_v26 }
  0xd9   : > { %7979 = vmatpush3.bf16.msra.mxu0 %v8750_v43  ;;  %v8804_v43 = vld [vmem:[%s11342_s1 + $0x7d0] sm:$0xff]  }
  0xda   : > { %7980 = vmatprep.subr.bf16.mxu0 %v8753_v46 }
  0xdb   : > { %7915 = vmatpush3.bf16.msra.mxu1 %v8733_v27  ;;  %v8789_v27 = vld [vmem:[%s11342_s1 + $0x6f8] sm:$0xff]  }
  0xdc   : > { %7916 = vmatprep.subr.bf16.mxu1 %v8736_v30  ;;  %v8791_v30 = vld [vmem:[%s11342_s1 + $0x858] sm:$0xff]  }
  0xdd   : > { %7981 = vmatpush3.bf16.msra.mxu0 %v8757_v49 }
  0xde   : > { %7982 = vmatprep.subr.bf16.mxu0 %v8760_v52 }
  0xdf   : > { %7917 = vmatpush3.bf16.msra.mxu1 %v8737_v31  ;;  %v8792_v31 = vld [vmem:[%s9413_s17 + $0x68] ss:$296 sps:$4 sm:$0xff]  }
  0xe0   : > { %7918 = vmatprep.subr.bf16.mxu1 %v8743_v36  ;;  %v8798_v36 = vld [vmem:[%s11342_s1 + $0x860] sm:$0xff]  }
  0xe1   : > { %7983 = vmatpush3.bf16.msra.mxu0 %v8761_v53 }
  0xe2   : > { %7984 = vmatprep.subr.bf16.mxu0 %v8764_v56 }
  0xe3   : > { %7919 = vmatpush3.bf16.msra.mxu1 %v8744_v37  ;;  %v8799_v37 = vld [vmem:[%s11342_s1 + $0x820] sm:$0xff]  }
  0xe4   : > { %7920 = vmatprep.subr.bf16.mxu1 %v8747_v40  ;;  %v8801_v40 = vld [vmem:[%s11342_s1 + $0x788] sm:$0xff]  }
  0xe5   : > { %7985 = vmatpush3.bf16.msra.mxu0 %v8765_v57  ;;  %v8809_v57 = vld [vmem:[%s11342_s1 + $0x798] sm:$0xff]  }
  0xe6   : > { %7986 = vmatprep.subr.bf16.mxu0 %v8768_v60 }
  0xe7   : > { %7921 = vmatpush3.bf16.msra.mxu1 %v8748_v41  ;;  %v8802_v41 = vld [vmem:[%s11342_s1 + $0x868] sm:$0xff]  }
  0xe8   : > { %7922 = vmatprep.subr.bf16.mxu1 %v8751_v44 }
  0xe9   : > { %7987 = vmatpush3.bf16.msra.mxu0 %v8769_v61  ;;  %v8811_v61 = vld [vmem:[%s11342_s1 + $0x838] sm:$0xff]  }
  0xea   : > { %7988 = vmatprep.subr.bf16.mxu0 %v8772_v4  ;;  %v8818_v4 = vld [vmem:[%s11342_s1 + $0x900] sm:$0xff]  }
  0xeb   : > { %7923 = vmatpush3.bf16.msra.mxu1 %v8752_v45  ;;  %v8805_v45 = vld [vmem:[%s11342_s1 + $0x790] sm:$0xff]  }
  0xec   : > { %7952 = vmatprep.subr.bf16.mxu1 %v8758_v50 }
  0xed   : > { %7989 = vmatpush3.bf16.msra.mxu0 %v8773_v6  ;;  %v8820_v6 = vld [vmem:[%s11342_s1 + $0x7a8] sm:$0xff]  }
  0xee   : > { %5866 = vmatmul.mubr.bf16.vlgmr.msra.gmra.mrb[24].mxu1 %v8754_v47  ;;  %8018 = vmatprep.subr.bf16.mxu0 %v8779_v12  ;;  %v8824_v12 = vld [vmem:[%s11342_s1 + $0x7b0] sm:$0xff]  }
  0xef   : > { %7953 = vmatpush3.bf16.msra.mxu1 %v8759_v51  ;;  %5947 = vmatprep.mubr.bf16.mxu1 %v8794_v32  ;;  %v8807_v51 = vld [vmem:[%s11342_s1 + $0x830] sm:$0xff]  }
  0xf0   : > { %7954 = vmatprep.subr.bf16.mxu1 %v8762_v54  ;;  %5989 = vmatmul.mubr.bf16.vlgmr.msra.gmra.mrb[24].mxu0 %v8776_v10  ;;  %v8808_v54 = vld [vmem:[%s11342_s1 + $0x7d8] sm:$0xff]   ;;  %v8823_v10 = vld [vmem:[%s11342_s1 + $0x7f0] sm:$0xff]  }
  0xf1   : > { %8019 = vmatpush3.bf16.msra.mxu0 %v8780_v13 }
  0xf2   : > { %8020 = vmatprep.subr.bf16.mxu0 %v8783_v16 }
  0xf3   : > { %7955 = vmatpush3.bf16.msra.mxu1 %v8763_v55 }
  0xf4   : > { %7956 = vmatprep.subr.bf16.mxu1 %v8766_v58  ;;  %v8810_v58 = vld [vmem:[%s11342_s1 + $0x878] sm:$0xff]  }
  0xf5   : > { %8021 = vmatpush3.bf16.msra.mxu0 %v8784_v17  ;;  %v8826_v17 = vld [vmem:[%s11342_s1 + $0x910] sm:$0xff]  }
  0xf6   : > { %8022 = vmatprep.subr.bf16.mxu0 %v8787_v22  ;;  %v8830_v22 = vld [vmem:[%s9413_s17 + $0x78] ss:$296 sps:$4 sm:$0xff]  }
  0xf7   : > { %7957 = vmatpush3.bf16.msra.mxu1 %v8767_v59 }
  0xf8   : > { %7958 = vmatprep.subr.bf16.mxu1 %v8770_v63 }
  0xf9   : > { %8023 = vmatpush3.bf16.msra.mxu0 %v8788_v25  ;;  %v8834_v25 = vld [vmem:[%s11342_s1 + $0x8c0] sm:$0xff]  }
  0xfa   : > { %8024 = vmatprep.subr.bf16.mxu0 %v8791_v30  ;;  %v8839_v30 = vld [vmem:[%s11342_s1 + $0x888] sm:$0xff]  }
  0xfb   : > { %7959 = vmatpush3.bf16.msra.mxu1 %v8771_v1  ;;  %v8814_v1 = vld [vmem:[%s9413_s17 + $0x80] ss:$296 sps:$4 sm:$0xff]  }
  0xfc   : > { %7960 = vmatprep.subr.bf16.mxu1 %v8774_v8  ;;  %v8822_v8 = vld [vmem:[%s11342_s1 + $0x908] sm:$0xff]  }
  0xfd   : > { %8025 = vmatpush3.bf16.msra.mxu0 %v8795_v33  ;;  %v8841_v33 = vld [vmem:[%s11342_s1 + $0x928] sm:$0xff]  }
  0xfe   : > { %8026 = vmatprep.subr.bf16.mxu0 %v8798_v36 }
  0xff   : > { %7961 = vmatpush3.bf16.msra.mxu1 %v8775_v9 }
 0x100   : > { %7962 = vmatprep.subr.bf16.mxu1 %v8781_v14 }
 0x101   : > { %v7682_v62 = vpop.f32.mrb[0].mxu1  ;;  %8027 = vmatpush3.bf16.msra.mxu0 %v8799_v37 }
 0x102   : > { %v7683_v0 = vpop.f32.mrb[1].mxu1  ;;  %8028 = vmatprep.subr.bf16.mxu0 %v8802_v41 }
 0x103   : > { %v10071_v2 = vadd.f32 %v7683_v0, %v7682_v62  ;;  %v7685_v3 = vpop.f32.mrb[2].mxu1  ;;  %7963 = vmatpush3.bf16.msra.mxu1 %v8782_v15  ;;  %v7726_v19 = vpop.f32.mrb[0].mxu0  ;;  %v8812_v62 = vld [vmem:[%s11342_s1 + $0x7e0] sm:$0xff]   ;;  %v8825_v15 = vld [vmem:[%s11342_s1 + $0x950] sm:$0xff]  }
 0x104   : > { %v7686_v5 = vpop.f32.mrb[3].mxu1  ;;  %v7727_v21 = vpop.f32.mrb[1].mxu0  ;;  %7964 = vmatprep.subr.bf16.mxu1 %v8785_v18  ;;  %v8813_v0 = vld [vmem:[%s11342_s1 + $0x7a0] sm:$0xff]  }
 0x105   : > { %v10079_v7 = vadd.f32 %v7686_v5, %v7685_v3  ;;  %v7728_v23 = vadd.f32 %v7727_v21, %v7726_v19  ;;  %v7729_v24 = vpop.f32.mrb[2].mxu0  ;;  %8029 = vmatpush3.bf16.msra.mxu0 %v8803_v42  ;;  %v5417_v47 = vadd.f32 %v10071_v2, %v6999_v39  ;;  %v8816_v2 = vld [vmem:[%s9413_s17 + $0x84] ss:$296 sps:$4 sm:$0xff]   ;;  %v8827_v19 = vld [vmem:[%s11342_s1 + $0x7f8] sm:$0xff]  }
 0x106   : > { %v7730_v26 = vpop.f32.mrb[3].mxu0  ;;  %8030 = vmatprep.subr.bf16.mxu0 %v8806_v48  ;;  %v8817_v3 = vld [vmem:[%s11342_s1 + $0x940] sm:$0xff]   ;;  %6070 = vmatprep.mubr.bf16.mxu0 %v8816_v2  ;;  %v8819_v5 = vld [vmem:[%s11342_s1 + $0x7e8] sm:$0xff]   ;;  %v8829_v21 = vld [vmem:[%s11342_s1 + $0x958] sm:$0xff]  }
 0x107   : > { %7965 = vmatpush3.bf16.msra.mxu1 %v8786_v20  ;;  %v7731_v28 = vadd.f32 %v7730_v26, %v7729_v24  ;;  %v5420_v53 = vadd.f32 %v10079_v7, %v6999_v39  ;;  %v8821_v7 = vld [vmem:[%s11342_s1 + $0x948] sm:$0xff]   ;;  %v8828_v20 = vld [vmem:[%s11342_s1 + $0x7b8] sm:$0xff]   ;;  %v8835_v26 = vld [vmem:[%s11342_s1 + $0x880] sm:$0xff]  }
 0x108   : > { %7966 = vmatprep.subr.bf16.mxu1 %v8789_v27  ;;  %v8833_v24 = vld [vmem:[%s11342_s1 + $0x918] sm:$0xff]   ;;  %v8836_v27 = vld [vmem:[%s11342_s1 + $0x960] sm:$0xff]   ;;  %v8862_v2 = vld [vmem:[%s11342_s1 + $0x8b0] sm:$0xff]  }
 0x109   : > { %8031 = vmatpush3.bf16.msra.mxu0 %v8807_v51  ;;  %v8848_v48 = vld [vmem:[%s11342_s1 + $0x978] sm:$0xff]   ;;  %v8850_v51 = vld [vmem:[%s11342_s1 + $0x8e0] sm:$0xff]  }
 0x10a   : > { %8032 = vmatprep.subr.bf16.mxu0 %v8810_v58  ;;  %v8858_v58 = vld [vmem:[%s11342_s1 + $0x8a8] sm:$0xff]  }
 0x10b   : > { %7967 = vmatpush3.bf16.msra.mxu1 %v8790_v29  ;;  %v8838_v29 = vld [vmem:[%s11342_s1 + $0x8c8] sm:$0xff]  }
 0x10c   : > { %7996 = vmatprep.subr.bf16.mxu1 %v8796_v34 }
 0x10d   : > { %8033 = vmatpush3.bf16.msra.mxu0 %v8811_v61  ;;  %v8860_v61 = vld [vmem:[%s11342_s1 + $0xa08] sm:$0xff]  }
 0x10e   : > { %5948 = vmatmul.mubr.bf16.vlgmr.msra.gmra.mrb[28].mxu1 %v8792_v31  ;;  %8062 = vmatprep.subr.bf16.mxu0 %v8817_v3  ;;  %v8840_v31 = vld [vmem:[%s11342_s1 + $0x968] sm:$0xff]  }
 0x10f   : > { %7997 = vmatpush3.bf16.msra.mxu1 %v8797_v35  ;;  %v8842_v35 = vld [vmem:[%s11342_s1 + $0x8d0] sm:$0xff]  }
 0x110   : > { %7998 = vmatprep.subr.bf16.mxu1 %v8800_v38  ;;  %6071 = vmatmul.mubr.bf16.vlgmr.msra.gmra.mrb[28].mxu0 %v8814_v1  ;;  %v8843_v38 = vld [vmem:[%s11342_s1 + $0x890] sm:$0xff]  }
 0x111   : > { %8063 = vmatpush3.bf16.msra.mxu0 %v8818_v4  ;;  %v8863_v4 = vld [vmem:[%s11342_s1 + $0xa50] sm:$0xff]  }
 0x112   : > { %8064 = vmatprep.subr.bf16.mxu0 %v8821_v7  ;;  %v8865_v7 = vld [vmem:[%s11342_s1 + $0x8f8] sm:$0xff]  }
 0x113   : > { %7999 = vmatpush3.bf16.msra.mxu1 %v8801_v40  ;;  %v8844_v40 = vld [vmem:[%s11342_s1 + $0x970] sm:$0xff]  }
 0x114   : > { %8000 = vmatprep.subr.bf16.mxu1 %v8804_v43  ;;  %v8845_v43 = vld [vmem:[%s11342_s1 + $0x930] sm:$0xff]  }
 0x115   : > { %8065 = vmatpush3.bf16.msra.mxu0 %v8822_v8  ;;  %v8866_v8 = vld [vmem:[%s11342_s1 + $0x8b8] sm:$0xff]  }
 0x116   : > { %8066 = vmatprep.subr.bf16.mxu0 %v8825_v15  ;;  %v8874_v15 = vld [vmem:[%s11342_s1 + $0xa60] sm:$0xff]  }
 0x117   : > { %8001 = vmatpush3.bf16.msra.mxu1 %v8805_v45 }
 0x118   : > { %8002 = vmatprep.subr.bf16.mxu1 %v8808_v54  ;;  %v8854_v54 = vld [vmem:[%s9413_s17 + $0x94] ss:$296 sps:$4 sm:$0xff]  }
 0x119   : > { %8067 = vmatpush3.bf16.msra.mxu0 %v8826_v17  ;;  %6152 = vmatprep.mubr.bf16.mxu0 %v8854_v54  ;;  %v8876_v17 = vld [vmem:[%s11342_s1 + $0x9c8] sm:$0xff]  }
 0x11a   : > { %8068 = vmatprep.subr.bf16.mxu0 %v8829_v21  ;;  %v8878_v21 = vld [vmem:[%s11342_s1 + $0xa68] sm:$0xff]  }
 0x11b   : > { %8003 = vmatpush3.bf16.msra.mxu1 %v8809_v57  ;;  %v8857_v57 = vld [vmem:[%s11342_s1 + $0x8e8] sm:$0xff]  }
 0x11c   : > { %8004 = vmatprep.subr.bf16.mxu1 %v8812_v62 }
 0x11d   : > { %8069 = vmatpush3.bf16.msra.mxu0 %v8833_v24  ;;  %v8879_v24 = vld [vmem:[%s11342_s1 + $0xa28] sm:$0xff]  }
 0x11e   : > { %8070 = vmatprep.subr.bf16.mxu0 %v8836_v27 }
 0x11f   : > { %8005 = vmatpush3.bf16.msra.mxu1 %v8813_v0 }
 0x120   : > { %8006 = vmatprep.subr.bf16.mxu1 %v8819_v5 }
 0x121   : > { %v7704_v44 = vpop.f32.mrb[4].mxu1 }
 0x122   : > { %v7705_v46 = vpop.f32.mrb[5].mxu1 }
 0x123   : > { %v7706_v49 = vadd.f32 %v7705_v46, %v7704_v44  ;;  %v7707_v50 = vpop.f32.mrb[6].mxu1  ;;  %8007 = vmatpush3.bf16.msra.mxu1 %v8820_v6  ;;  %v7770_v9 = vpop.f32.mrb[4].mxu0  ;;  %v8846_v44 = vld [vmem:[%s11342_s1 + $0x8d8] sm:$0xff]   ;;  %v8864_v6 = vld [vmem:[%s11342_s1 + $0xa10] sm:$0xff]  }
 0x124   : > { %v7708_v52 = vpop.f32.mrb[7].mxu1  ;;  %v7771_v11 = vpop.f32.mrb[5].mxu0  ;;  %8008 = vmatprep.subr.bf16.mxu1 %v8823_v10  ;;  %v8868_v10 = vld [vmem:[%s9413_s17 + $0x88] ss:$296 sps:$4 sm:$0xff]  }
 0x125   : > { %v5458_v55 = vadd.f32 %v7706_v49, %v5417_v47  ;;  %v7709_v56 = vadd.f32 %v7708_v52, %v7707_v50  ;;  %v7772_v13 = vadd.f32 %v7771_v11, %v7770_v9  ;;  %v7773_v14 = vpop.f32.mrb[6].mxu0  ;;  %v8847_v47 = vld [vmem:[%s11342_s1 + $0x898] sm:$0xff]   ;;  %v8851_v52 = vld [vmem:[%s11342_s1 + $0x8a0] sm:$0xff]   ;;  %v8870_v11 = vld [vmem:[%s9413_s17 + $0x8c] ss:$296 sps:$4 sm:$0xff]  }
 0x126   : > { %v7774_v16 = vpop.f32.mrb[7].mxu0  ;;  %v8849_v50 = vld [vmem:[%s11342_s1 + $0x938] sm:$0xff]  }
 0x127   : > { %v5461_v59 = vadd.f32 %v7709_v56, %v5420_v53  ;;  %v10183_v60 = vadd.f32 %v7728_v23, %v5458_v55  ;;  %8009 = vmatpush3.bf16.msra.mxu1 %v8824_v12  ;;  %v7775_v18 = vadd.f32 %v7774_v16, %v7773_v14  ;;  %v8832_v23 = vld [vmem:[%s9413_s17 + $0x7c] ss:$296 sps:$4 sm:$0xff]   ;;  %v8852_v53 = vld [vmem:[%s9413_s17 + $0x90] ss:$296 sps:$4 sm:$0xff]  }
 0x128   : > { %8010 = vmatprep.subr.bf16.mxu1 %v8827_v19  ;;  %6029 = vmatprep.mubr.bf16.mxu1 %v8832_v23  ;;  %v8855_v55 = vld [vmem:[%s11342_s1 + $0xa40] sm:$0xff]   ;;  %v8867_v9 = vld [vmem:[%s11342_s1 + $0xa58] sm:$0xff]   ;;  %v8877_v19 = vld [vmem:[%s11342_s1 + $0x988] sm:$0xff]  }
 0x129   : > { %v10191_v63 = vadd.f32 %v7731_v28, %v5461_v59  ;;  %v8837_v28 = vld [vmem:[%s11342_s1 + $0x920] sm:$0xff]   ;;  %v8859_v59 = vld [vmem:[%s11342_s1 + $0xa48] sm:$0xff]   ;;  %v8871_v12 = vld [vmem:[%s11342_s1 + $0xa18] sm:$0xff]  }
 0x12a   : > { %8071 = vmatpush3.bf16.msra.mxu0 %v8837_v28  ;;  %v8856_v56 = vld [vmem:[%s11342_s1 + $0xa00] sm:$0xff]  }
 0x12b   : > { %8011 = vmatpush3.bf16.msra.mxu1 %v8828_v20  ;;  %8072 = vmatprep.subr.bf16.mxu0 %v8840_v31  ;;  %v8873_v14 = vld [vmem:[%s11342_s1 + $0x980] sm:$0xff]  }
 0x12c   : > { %8040 = vmatprep.subr.bf16.mxu1 %v8834_v25  ;;  %v8875_v16 = vld [vmem:[%s11342_s1 + $0xa20] sm:$0xff]  }
 0x12e   : > { %6030 = vmatmul.mubr.bf16.vlgmr.msra.gmra.mrb[32].mxu1 %v8830_v22  ;;  %8073 = vmatpush3.bf16.msra.mxu0 %v8841_v33  ;;  %v8883_v33 = vld [vmem:[%s11342_s1 + $0xa30] sm:$0xff]  }
 0x12f   : > { %8041 = vmatpush3.bf16.msra.mxu1 %v8835_v26  ;;  %8074 = vmatprep.subr.bf16.mxu0 %v8844_v40  ;;  %v8880_v26 = vld [vmem:[%s11342_s1 + $0x9d0] sm:$0xff]   ;;  %v8889_v40 = vld [vmem:[%s11342_s1 + $0x9a0] sm:$0xff]  }
 0x130   : > { %8042 = vmatprep.subr.bf16.mxu1 %v8838_v29  ;;  %6111 = vmatprep.mubr.bf16.mxu1 %v8870_v11  ;;  %v8881_v29 = vld [vmem:[%s11342_s1 + $0x990] sm:$0xff]   ;;  %v8916_v11 = vld [vmem:[%s11342_s1 + $0xb68] sm:$0xff]  }
 0x132   : > { %8075 = vmatpush3.bf16.msra.mxu0 %v8845_v43  ;;  %v8893_v43 = vld [vmem:[%s11342_s1 + $0xb40] sm:$0xff]  }
 0x133   : > { %8043 = vmatpush3.bf16.msra.mxu1 %v8839_v30  ;;  %8076 = vmatprep.subr.bf16.mxu0 %v8848_v48  ;;  %v8882_v30 = vld [vmem:[%s11342_s1 + $0xa70] sm:$0xff]   ;;  %v8898_v48 = vld [vmem:[%s11342_s1 + $0xb08] sm:$0xff]  }
 0x134   : > { %8044 = vmatprep.subr.bf16.mxu1 %v8842_v35 }
 0x136   : > { %8077 = vmatpush3.bf16.msra.mxu0 %v8849_v50  ;;  %v8899_v50 = vld [vmem:[%s11342_s1 + $0x9f0] sm:$0xff]  }
 0x137   : > { %8045 = vmatpush3.bf16.msra.mxu1 %v8843_v38  ;;  %8106 = vmatprep.subr.bf16.mxu0 %v8855_v55  ;;  %v8887_v38 = vld [vmem:[%s11342_s1 + $0xa38] sm:$0xff]   ;;  %v8901_v55 = vld [vmem:[%s11342_s1 + $0xb50] sm:$0xff]  }
 0x138   : > { %8046 = vmatprep.subr.bf16.mxu1 %v8846_v44  ;;  %v8894_v44 = vld [vmem:[%s11342_s1 + $0xb00] sm:$0xff]  }
 0x139   : > { %6153 = vmatmul.mubr.bf16.vlgmr.msra.gmra.mrb[32].mxu0 %v8852_v53 }
 0x13a   : > { %8107 = vmatpush3.bf16.msra.mxu0 %v8856_v56 }
 0x13b   : > { %8047 = vmatpush3.bf16.msra.mxu1 %v8847_v47  ;;  %8108 = vmatprep.subr.bf16.mxu0 %v8859_v59  ;;  %v8897_v47 = vld [vmem:[%s11342_s1 + $0xb48] sm:$0xff]   ;;  %v8903_v59 = vld [vmem:[%s11342_s1 + $0x9f8] sm:$0xff]  }
 0x13c   : > { %8048 = vmatprep.subr.bf16.mxu1 %v8850_v51 }
 0x13e   : > { %8109 = vmatpush3.bf16.msra.mxu0 %v8860_v61  ;;  %v8905_v61 = vld [vmem:[%s11342_s1 + $0xb58] sm:$0xff]  }
 0x13f   : > { %8049 = vmatpush3.bf16.msra.mxu1 %v8851_v52  ;;  %8110 = vmatprep.subr.bf16.mxu0 %v8863_v4  ;;  %v8900_v52 = vld [vmem:[%s11342_s1 + $0x9b0] sm:$0xff]   ;;  %v8913_v4 = vld [vmem:[%s11342_s1 + $0xb20] sm:$0xff]  }
 0x140   : > { %8050 = vmatprep.subr.bf16.mxu1 %v8857_v57  ;;  %v8902_v57 = vld [vmem:[%s11342_s1 + $0xb10] sm:$0xff]  }
 0x141   : > { %v7748_v32 = vpop.f32.mrb[8].mxu1 }
 0x142   : > { %v7749_v34 = vpop.f32.mrb[9].mxu1  ;;  %8111 = vmatpush3.bf16.msra.mxu0 %v8864_v6  ;;  %v8914_v6 = vld [vmem:[%s11342_s1 + $0xac8] sm:$0xff]  }
 0x143   : > { %v7750_v36 = vadd.f32 %v7749_v34, %v7748_v32  ;;  %v7751_v37 = vpop.f32.mrb[10].mxu1  ;;  %8051 = vmatpush3.bf16.msra.mxu1 %v8858_v58  ;;  %8112 = vmatprep.subr.bf16.mxu0 %v8867_v9  ;;  %v8884_v34 = vld [vmem:[%s11342_s1 + $0x9d8] sm:$0xff]  }
 0x144   : > { %v7752_v39 = vpop.f32.mrb[11].mxu1 }
 0x145   : > { %v5540_v41 = vadd.f32 %v7750_v36, %v10183_v60  ;;  %v7753_v42 = vadd.f32 %v7752_v39, %v7751_v37  ;;  %v7814_v60 = vpop.f32.mrb[8].mxu0  ;;  %v8885_v36 = vld [vmem:[%s11342_s1 + $0x998] sm:$0xff]   ;;  %v8888_v39 = vld [vmem:[%s11342_s1 + $0x9e0] sm:$0xff]  }
 0x146   : > { %v7815_v62 = vpop.f32.mrb[9].mxu0  ;;  %8113 = vmatpush3.bf16.msra.mxu0 %v8871_v12  ;;  %v8886_v37 = vld [vmem:[%s11342_s1 + $0xa78] sm:$0xff]  }
 0x147   : > { %v5543_v45 = vadd.f32 %v7753_v42, %v10191_v63  ;;  %v10283_v46 = vadd.f32 %v7772_v13, %v5540_v41  ;;  %v8861_v63 = vld [vmem:[%s11342_s1 + $0x8f0] sm:$0xff]   ;;  %v7816_v0 = vadd.f32 %v7815_v62, %v7814_v60  ;;  %v7817_v1 = vpop.f32.mrb[10].mxu0  ;;  %v8872_v13 = vld [vmem:[%s11342_s1 + $0x9c0] sm:$0xff]   ;;  %8114 = vmatprep.subr.bf16.mxu0 %v8874_v15  ;;  %v8904_v60 = vld [vmem:[%s11342_s1 + $0x9b8] sm:$0xff]  }
 0x148   : > { %v7818_v3 = vpop.f32.mrb[11].mxu0  ;;  %8052 = vmatprep.subr.bf16.mxu1 %v8861_v63  ;;  %v8890_v41 = vld [vmem:[%s9413_s17 + $0xa0] ss:$296 sps:$4 sm:$0xff]   ;;  %v8892_v42 = vld [vmem:[%s9413_s17 + $0xa4] ss:$296 sps:$4 sm:$0xff]  }
 0x149   : > { %v10291_v49 = vadd.f32 %v7775_v18, %v5543_v45  ;;  %v7819_v5 = vadd.f32 %v7818_v3, %v7817_v1  ;;  %8053 = vmatpush3.bf16.msra.mxu1 %v8862_v2  ;;  %6234 = vmatprep.mubr.bf16.mxu0 %v8892_v42  ;;  %v8895_v45 = vld [vmem:[%s11342_s1 + $0x9e8] sm:$0xff]   ;;  %v8906_v62 = vld [vmem:[%s9413_s17 + $0x98] ss:$296 sps:$4 sm:$0xff]   ;;  %v8908_v63 = vld [vmem:[%s9413_s17 + $0x9c] ss:$296 sps:$4 sm:$0xff]  }
 0x14a   : > { %8054 = vmatprep.subr.bf16.mxu1 %v8865_v7  ;;  %8115 = vmatpush3.bf16.msra.mxu0 %v8875_v16  ;;  %v8910_v1 = vld [vmem:[%s11342_s1 + $0xac0] sm:$0xff]   ;;  %v8918_v16 = vld [vmem:[%s11342_s1 + $0xad0] sm:$0xff]  }
 0x14b   : > { %8116 = vmatprep.subr.bf16.mxu0 %v8878_v21  ;;  %v8911_v2 = vld [vmem:[%s11342_s1 + $0xa80] sm:$0xff]   ;;  %v8921_v21 = vld [vmem:[%s11342_s1 + $0xb30] sm:$0xff]  }
 0x14c   : > { %v8912_v3 = vld [vmem:[%s11342_s1 + $0xb60] sm:$0xff]  }
 0x14d   : > { %8055 = vmatpush3.bf16.msra.mxu1 %v8866_v8  ;;  %v8915_v8 = vld [vmem:[%s11342_s1 + $0xa88] sm:$0xff]  }
 0x14e   : > { %8084 = vmatprep.subr.bf16.mxu1 %v8872_v13  ;;  %8117 = vmatpush3.bf16.msra.mxu0 %v8879_v24  ;;  %v8917_v13 = vld [vmem:[%s11342_s1 + $0xb28] sm:$0xff]   ;;  %v8923_v24 = vld [vmem:[%s11342_s1 + $0xa98] sm:$0xff]  }
 0x14f   : > { %8118 = vmatprep.subr.bf16.mxu0 %v8882_v30  ;;  %v8930_v30 = vld [vmem:[%s9413_s17 + $0xb4] ss:$296 sps:$4 sm:$0xff]  }
 0x150   : > { %6112 = vmatmul.mubr.bf16.vlgmr.msra.gmra.mrb[36].mxu1 %v8868_v10 }
 0x151   : > { %8085 = vmatpush3.bf16.msra.mxu1 %v8873_v14  ;;  %6193 = vmatprep.mubr.bf16.mxu1 %v8908_v63 }
 0x152   : > { %8086 = vmatprep.subr.bf16.mxu1 %v8876_v17  ;;  %8119 = vmatpush3.bf16.msra.mxu0 %v8883_v33  ;;  %v8919_v17 = vld [vmem:[%s11342_s1 + $0xa90] sm:$0xff]   ;;  %v8933_v33 = vld [vmem:[%s11342_s1 + $0xae8] sm:$0xff]  }
 0x153   : > { %8120 = vmatprep.subr.bf16.mxu0 %v8886_v37 }
 0x155   : > { %8087 = vmatpush3.bf16.msra.mxu1 %v8877_v19 }
 0x156   : > { %8088 = vmatprep.subr.bf16.mxu1 %v8880_v26  ;;  %8121 = vmatpush3.bf16.msra.mxu0 %v8887_v38  ;;  %v8925_v26 = vld [vmem:[%s11342_s1 + $0xb38] sm:$0xff]   ;;  %v8937_v38 = vld [vmem:[%s11342_s1 + $0xaf0] sm:$0xff]  }
 0x157   : > { %8150 = vmatprep.subr.bf16.mxu0 %v8893_v43  ;;  %v8939_v43 = vld [vmem:[%s11342_s1 + $0xc50] sm:$0xff]  }
 0x159   : > { %8089 = vmatpush3.bf16.msra.mxu1 %v8881_v29  ;;  %6235 = vmatmul.mubr.bf16.vlgmr.msra.gmra.mrb[36].mxu0 %v8890_v41  ;;  %v8928_v29 = vld [vmem:[%s9413_s17 + $0xb0] ss:$296 sps:$4 sm:$0xff]  }
 0x15a   : > { %8090 = vmatprep.subr.bf16.mxu1 %v8884_v34  ;;  %8151 = vmatpush3.bf16.msra.mxu0 %v8894_v44  ;;  %v8934_v34 = vld [vmem:[%s11342_s1 + $0xaa8] sm:$0xff]  }
 0x15b   : > { %8152 = vmatprep.subr.bf16.mxu0 %v8897_v47  ;;  %6316 = vmatprep.mubr.bf16.mxu0 %v8930_v30  ;;  %v8941_v47 = vld [vmem:[%s11342_s1 + $0xaf8] sm:$0xff]   ;;  %v8976_v30 = vld [vmem:[%s11342_s1 + $0xbb0] sm:$0xff]  }
 0x15d   : > { %8091 = vmatpush3.bf16.msra.mxu1 %v8885_v36  ;;  %v8936_v36 = vld [vmem:[%s11342_s1 + $0xc08] sm:$0xff]  }
 0x15e   : > { %8092 = vmatprep.subr.bf16.mxu1 %v8888_v39  ;;  %8153 = vmatpush3.bf16.msra.mxu0 %v8898_v48  ;;  %v8942_v48 = vld [vmem:[%s11342_s1 + $0xab8] sm:$0xff]  }
 0x15f   : > { %8154 = vmatprep.subr.bf16.mxu0 %v8901_v55  ;;  %v8950_v55 = vld [vmem:[%s11342_s1 + $0xc60] sm:$0xff]  }
 0x161   : > { %v7792_v18 = vpop.f32.mrb[12].mxu1  ;;  %8093 = vmatpush3.bf16.msra.mxu1 %v8889_v40  ;;  %v8938_v40 = vld [vmem:[%s11342_s1 + $0xab0] sm:$0xff]  }
 0x162   : > { %v7793_v20 = vpop.f32.mrb[13].mxu1  ;;  %8094 = vmatprep.subr.bf16.mxu1 %v8895_v45  ;;  %8155 = vmatpush3.bf16.msra.mxu0 %v8902_v57  ;;  %v8940_v45 = vld [vmem:[%s11342_s1 + $0xc10] sm:$0xff]   ;;  %v8952_v57 = vld [vmem:[%s11342_s1 + $0xbc8] sm:$0xff]  }
 0x163   : > { %v7794_v22 = vadd.f32 %v7793_v20, %v7792_v18  ;;  %v7795_v23 = vpop.f32.mrb[14].mxu1  ;;  %8156 = vmatprep.subr.bf16.mxu0 %v8905_v61  ;;  %v8920_v20 = vld [vmem:[%s11342_s1 + $0xb70] sm:$0xff]   ;;  %v8954_v61 = vld [vmem:[%s11342_s1 + $0xc68] sm:$0xff]  }
 0x164   : > { %v7796_v25 = vpop.f32.mrb[15].mxu1 }
 0x165   : > { %v5622_v27 = vadd.f32 %v7794_v22, %v10283_v46  ;;  %v7797_v28 = vadd.f32 %v7796_v25, %v7795_v23  ;;  %v8896_v46 = vld [vmem:[%s11342_s1 + $0x9a8] sm:$0xff]   ;;  %v8922_v23 = vld [vmem:[%s11342_s1 + $0xad8] sm:$0xff]  }
 0x166   : > { %8095 = vmatpush3.bf16.msra.mxu1 %v8896_v46  ;;  %v8924_v25 = vld [vmem:[%s11342_s1 + $0xb78] sm:$0xff]  }
 0x167   : > { %v5625_v31 = vadd.f32 %v7797_v28, %v10291_v49  ;;  %v10383_v32 = vadd.f32 %v7816_v0, %v5622_v27  ;;  %v7858_v49 = vpop.f32.mrb[12].mxu0  ;;  %8096 = vmatprep.subr.bf16.mxu1 %v8899_v50  ;;  %v8909_v0 = vld [vmem:[%s11342_s1 + $0xb18] sm:$0xff]   ;;  %v8926_v27 = vld [vmem:[%s11342_s1 + $0xae0] sm:$0xff]   ;;  %v8944_v50 = vld [vmem:[%s9413_s17 + $0xa8] ss:$296 sps:$4 sm:$0xff]  }
 0x168   : > { %v7859_v51 = vpop.f32.mrb[13].mxu0  ;;  %8157 = vmatpush3.bf16.msra.mxu0 %v8909_v0  ;;  %v8927_v28 = vld [vmem:[%s11342_s1 + $0xaa0] sm:$0xff]   ;;  %v8955_v0 = vld [vmem:[%s11342_s1 + $0xc28] sm:$0xff]  }
 0x169   : > { %v10391_v35 = vadd.f32 %v7819_v5, %v5625_v31  ;;  %v7860_v53 = vadd.f32 %v7859_v51, %v7858_v49  ;;  %v7861_v54 = vpop.f32.mrb[14].mxu0  ;;  %8158 = vmatprep.subr.bf16.mxu0 %v8912_v3  ;;  %v8931_v31 = vld [vmem:[%s11342_s1 + $0xc40] sm:$0xff]   ;;  %v8943_v49 = vld [vmem:[%s11342_s1 + $0xc58] sm:$0xff]   ;;  %v8946_v51 = vld [vmem:[%s9413_s17 + $0xac] ss:$296 sps:$4 sm:$0xff]  }
 0x16a   : > { %v7862_v56 = vpop.f32.mrb[15].mxu0  ;;  %8097 = vmatpush3.bf16.msra.mxu1 %v8900_v52  ;;  %v8947_v52 = vld [vmem:[%s11342_s1 + $0xc18] sm:$0xff]  }
 0x16b   : > { %v7863_v58 = vadd.f32 %v7862_v56, %v7861_v54  ;;  %8098 = vmatprep.subr.bf16.mxu1 %v8903_v59  ;;  %v8949_v54 = vld [vmem:[%s11342_s1 + $0xb80] sm:$0xff]   ;;  %v8953_v59 = vld [vmem:[%s11342_s1 + $0xb88] sm:$0xff]  }
 0x16c   : > { %8159 = vmatpush3.bf16.msra.mxu0 %v8913_v4  ;;  %v8951_v56 = vld [vmem:[%s11342_s1 + $0xc20] sm:$0xff]  }
 0x16d   : > { %8160 = vmatprep.subr.bf16.mxu0 %v8916_v11 }
 0x16e   : > { %8099 = vmatpush3.bf16.msra.mxu1 %v8904_v60 }
 0x16f   : > { %8128 = vmatprep.subr.bf16.mxu1 %v8910_v1 }
 0x170   : > { %8161 = vmatpush3.bf16.msra.mxu0 %v8917_v13  ;;  %v8962_v13 = vld [vmem:[%s11342_s1 + $0xc78] sm:$0xff]  }
 0x171   : > { %6194 = vmatmul.mubr.bf16.vlgmr.msra.gmra.mrb[40].mxu1 %v8906_v62  ;;  %8162 = vmatprep.subr.bf16.mxu0 %v8920_v20  ;;  %v8970_v20 = vld [vmem:[%s11342_s1 + $0xd00] sm:$0xff]  }
 0x172   : > { %8129 = vmatpush3.bf16.msra.mxu1 %v8911_v2  ;;  %6275 = vmatprep.mubr.bf16.mxu1 %v8946_v51  ;;  %v8956_v2 = vld [vmem:[%s11342_s1 + $0xbd0] sm:$0xff]  }
 0x173   : > { %8130 = vmatprep.subr.bf16.mxu1 %v8914_v6  ;;  %v8958_v6 = vld [vmem:[%s11342_s1 + $0xc70] sm:$0xff]  }
 0x174   : > { %8163 = vmatpush3.bf16.msra.mxu0 %v8921_v21  ;;  %v8971_v21 = vld [vmem:[%s11342_s1 + $0xbe8] sm:$0xff]  }
 0x175   : > { %8164 = vmatprep.subr.bf16.mxu0 %v8924_v25  ;;  %v8974_v25 = vld [vmem:[%s11342_s1 + $0xd08] sm:$0xff]  }
 0x176   : > { %8131 = vmatpush3.bf16.msra.mxu1 %v8915_v8 }
 0x177   : > { %8132 = vmatprep.subr.bf16.mxu1 %v8918_v16  ;;  %v8965_v16 = vld [vmem:[%s11342_s1 + $0xba0] sm:$0xff]  }
 0x178   : > { %8165 = vmatpush3.bf16.msra.mxu0 %v8925_v26 }
 0x179   : > { %8194 = vmatprep.subr.bf16.mxu0 %v8931_v31 }
 0x17a   : > { %8133 = vmatpush3.bf16.msra.mxu1 %v8919_v17  ;;  %v8966_v17 = vld [vmem:[%s9413_s17 + $0xc0] ss:$296 sps:$4 sm:$0xff]  }
 0x17b   : > { %8134 = vmatprep.subr.bf16.mxu1 %v8922_v23  ;;  %6317 = vmatmul.mubr.bf16.vlgmr.msra.gmra.mrb[40].mxu0 %v8928_v29  ;;  %v8973_v23 = vld [vmem:[%s11342_s1 + $0xd48] sm:$0xff]  }
 0x17e   : > { %8135 = vmatpush3.bf16.msra.mxu1 %v8923_v24 }
 0x17f   : > { %8136 = vmatprep.subr.bf16.mxu1 %v8926_v27  ;;  %v8975_v27 = vld [vmem:[%s11342_s1 + $0xbf0] sm:$0xff]  }
 0x181   : > { %v7836_v5 = vpop.f32.mrb[16].mxu1 }
 0x182   : > { %v7837_v7 = vpop.f32.mrb[17].mxu1  ;;  %8137 = vmatpush3.bf16.msra.mxu1 %v8927_v28 }
 0x183   : > { %v7838_v9 = vadd.f32 %v7837_v7, %v7836_v5  ;;  %v7839_v10 = vpop.f32.mrb[18].mxu1  ;;  %8138 = vmatprep.subr.bf16.mxu1 %v8933_v33  ;;  %v7902_v37 = vpop.f32.mrb[16].mxu0  ;;  %v8957_v5 = vld [vmem:[%s11342_s1 + $0xb90] sm:$0xff]  }
 0x184   : > { %v7840_v12 = vpop.f32.mrb[19].mxu1  ;;  %v7903_v39 = vpop.f32.mrb[17].mxu0 }
 0x185   : > { %v5704_v14 = vadd.f32 %v7838_v9, %v10383_v32  ;;  %v7841_v15 = vadd.f32 %v7840_v12, %v7839_v10  ;;  %v8932_v32 = vld [vmem:[%s11342_s1 + $0xc00] sm:$0xff]   ;;  %v7904_v41 = vadd.f32 %v7903_v39, %v7902_v37  ;;  %v7905_v42 = vpop.f32.mrb[18].mxu0  ;;  %v8959_v9 = vld [vmem:[%s11342_s1 + $0xc30] sm:$0xff]   ;;  %v8960_v10 = vld [vmem:[%s11342_s1 + $0xbd8] sm:$0xff]  }
 0x186   : > { %8195 = vmatpush3.bf16.msra.mxu0 %v8932_v32  ;;  %8139 = vmatpush3.bf16.msra.mxu1 %v8934_v34  ;;  %v7906_v44 = vpop.f32.mrb[19].mxu0  ;;  %v8961_v12 = vld [vmem:[%s11342_s1 + $0xb98] sm:$0xff]   ;;  %v8977_v32 = vld [vmem:[%s11342_s1 + $0xd50] sm:$0xff]  }
 0x187   : > { %v5707_v18 = vadd.f32 %v7841_v15, %v10391_v35  ;;  %v10486_v19 = vadd.f32 %v7860_v53, %v5704_v14  ;;  %v8935_v35 = vld [vmem:[%s11342_s1 + $0xc48] sm:$0xff]   ;;  %8140 = vmatprep.subr.bf16.mxu1 %v8937_v38  ;;  %v7907_v46 = vadd.f32 %v7906_v44, %v7905_v42  ;;  %v8948_v53 = vld [vmem:[%s11342_s1 + $0xbc0] sm:$0xff]   ;;  %v8963_v14 = vld [vmem:[%s11342_s1 + $0xc38] sm:$0xff]  }
 0x188   : > { %8196 = vmatprep.subr.bf16.mxu0 %v8935_v35  ;;  %v8964_v15 = vld [vmem:[%s11342_s1 + $0xbe0] sm:$0xff]   ;;  %v8978_v34 = vld [vmem:[%s11342_s1 + $0xd10] sm:$0xff]   ;;  %v8979_v35 = vld [vmem:[%s11342_s1 + $0xbf8] sm:$0xff]  }
 0x189   : > { %v10494_v22 = vadd.f32 %v7863_v58, %v5707_v18  ;;  %v8968_v18 = vld [vmem:[%s9413_s17 + $0xc4] ss:$296 sps:$4 sm:$0xff]   ;;  %v8981_v37 = vld [vmem:[%s11342_s1 + $0xd58] sm:$0xff]  }
 0x18a   : > { %8197 = vmatpush3.bf16.msra.mxu0 %v8936_v36  ;;  %8141 = vmatpush3.bf16.msra.mxu1 %v8938_v40  ;;  %v8980_v36 = vld [vmem:[%s11342_s1 + $0xbb8] sm:$0xff]   ;;  %v8987_v42 = vld [vmem:[%s11342_s1 + $0xc80] sm:$0xff]  }
 0x18b   : > { %8198 = vmatprep.subr.bf16.mxu0 %v8939_v43  ;;  %8142 = vmatprep.subr.bf16.mxu1 %v8941_v47  ;;  %v8982_v38 = vld [vmem:[%s9413_s17 + $0xb8] ss:$296 sps:$4 sm:$0xff]   ;;  %v8984_v39 = vld [vmem:[%s9413_s17 + $0xbc] ss:$296 sps:$4 sm:$0xff]   ;;  %v8991_v47 = vld [vmem:[%s11342_s1 + $0xc88] sm:$0xff]  }
 0x18c   : > { %6398 = vmatprep.mubr.bf16.mxu0 %v8968_v18  ;;  %v8985_v40 = vld [vmem:[%s11342_s1 + $0xd18] sm:$0xff]   ;;  %v8988_v43 = vld [vmem:[%s11342_s1 + $0xd60] sm:$0xff]  }
 0x18d   : > { %v8989_v44 = vld [vmem:[%s11342_s1 + $0xd20] sm:$0xff]  }
 0x18e   : > { %8199 = vmatpush3.bf16.msra.mxu0 %v8940_v45  ;;  %8143 = vmatpush3.bf16.msra.mxu1 %v8942_v48  ;;  %v8990_v45 = vld [vmem:[%s11342_s1 + $0xcc8] sm:$0xff]  }
 0x18f   : > { %8200 = vmatprep.subr.bf16.mxu0 %v8943_v49  ;;  %8172 = vmatprep.subr.bf16.mxu1 %v8948_v53  ;;  %v8992_v49 = vld [vmem:[%s11342_s1 + $0xd68] sm:$0xff]  }
 0x191   : > { %6276 = vmatmul.mubr.bf16.vlgmr.msra.gmra.mrb[44].mxu1 %v8944_v50 }
 0x192   : > { %8201 = vmatpush3.bf16.msra.mxu0 %v8947_v52  ;;  %8173 = vmatpush3.bf16.msra.mxu1 %v8949_v54  ;;  %v8993_v52 = vld [vmem:[%s11342_s1 + $0xd28] sm:$0xff]   ;;  %v8994_v54 = vld [vmem:[%s11342_s1 + $0xcd0] sm:$0xff]  }
 0x193   : > { %8202 = vmatprep.subr.bf16.mxu0 %v8950_v55  ;;  %8174 = vmatprep.subr.bf16.mxu1 %v8952_v57  ;;  %v8995_v57 = vld [vmem:[%s11342_s1 + $0xc90] sm:$0xff]  }
 0x194   : > { %6357 = vmatprep.mubr.bf16.mxu1 %v8984_v39 }
 0x196   : > { %8203 = vmatpush3.bf16.msra.mxu0 %v8951_v56  ;;  %8175 = vmatpush3.bf16.msra.mxu1 %v8953_v59 }
 0x197   : > { %8204 = vmatprep.subr.bf16.mxu0 %v8954_v61  ;;  %8176 = vmatprep.subr.bf16.mxu1 %v8956_v2  ;;  %v8997_v61 = vld [vmem:[%s11342_s1 + $0xd30] sm:$0xff]   ;;  %v9001_v2 = vld [vmem:[%s11342_s1 + $0xd38] sm:$0xff]  }
 0x19a   : > { %8205 = vmatpush3.bf16.msra.mxu0 %v8955_v0  ;;  %8177 = vmatpush3.bf16.msra.mxu1 %v8957_v5  ;;  %v8999_v0 = vld [vmem:[%s11342_s1 + $0xc98] sm:$0xff]  }
 0x19b   : > { %8206 = vmatprep.subr.bf16.mxu0 %v8958_v6  ;;  %8178 = vmatprep.subr.bf16.mxu1 %v8960_v10  ;;  %v9004_v5 = vld [vmem:[%s9413_s17 + $0xd0] ss:$296 sps:$4 sm:$0xff]   ;;  %v9006_v6 = vld [vmem:[%s9413_s17 + $0xd4] ss:$296 sps:$4 sm:$0xff]   ;;  %v9010_v10 = vld [vmem:[%s11342_s1 + $0xca8] sm:$0xff]  }
 0x19e   : > { %8207 = vmatpush3.bf16.msra.mxu0 %v8959_v9  ;;  %8179 = vmatpush3.bf16.msra.mxu1 %v8961_v12  ;;  %v9009_v9 = vld [vmem:[%s11342_s1 + $0xce8] sm:$0xff]  }
 0x19f   : > { %8208 = vmatprep.subr.bf16.mxu0 %v8962_v13  ;;  %8180 = vmatprep.subr.bf16.mxu1 %v8964_v15  ;;  %v9012_v12 = vld [vmem:[%s11342_s1 + $0xe08] sm:$0xff]  }
 0x1a1   : > { %v7880_v58 = vpop.f32.mrb[20].mxu1 }
 0x1a2   : > { %v7881_v60 = vpop.f32.mrb[21].mxu1  ;;  %8209 = vmatpush3.bf16.msra.mxu0 %v8963_v14  ;;  %8181 = vmatpush3.bf16.msra.mxu1 %v8965_v16  ;;  %v9013_v14 = vld [vmem:[%s11342_s1 + $0xcf0] sm:$0xff]  }
 0x1a3   : > { %v7882_v62 = vadd.f32 %v7881_v60, %v7880_v58  ;;  %v7883_v63 = vpop.f32.mrb[22].mxu1  ;;  %8182 = vmatprep.subr.bf16.mxu1 %v8971_v21  ;;  %v7946_v24 = vpop.f32.mrb[20].mxu0  ;;  %v8996_v58 = vld [vmem:[%s11342_s1 + $0xd70] sm:$0xff]  }
 0x1a4   : > { %v7884_v1 = vpop.f32.mrb[23].mxu1  ;;  %v7947_v26 = vpop.f32.mrb[21].mxu0  ;;  %v9014_v16 = vld [vmem:[%s11342_s1 + $0xcb0] sm:$0xff]  }
 0x1a5   : > { %v5786_v3 = vadd.f32 %v7882_v62, %v10486_v19  ;;  %v7885_v4 = vadd.f32 %v7884_v1, %v7883_v63  ;;  %v8969_v19 = vld [vmem:[%s11342_s1 + $0xd40] sm:$0xff]   ;;  %6399 = vmatmul.mubr.bf16.vlgmr.msra.gmra.mrb[44].mxu0 %v8966_v17  ;;  %v7948_v28 = vadd.f32 %v7947_v26, %v7946_v24  ;;  %v7949_v29 = vpop.f32.mrb[22].mxu0  ;;  %v8998_v62 = vld [vmem:[%s11342_s1 + $0xcd8] sm:$0xff]   ;;  %v9016_v21 = vld [vmem:[%s11342_s1 + $0xe10] sm:$0xff]  }
 0x1a6   : > { %8238 = vmatprep.subr.bf16.mxu0 %v8969_v19  ;;  %v7950_v31 = vpop.f32.mrb[23].mxu0  ;;  %v9000_v1 = vld [vmem:[%s11342_s1 + $0xd78] sm:$0xff]   ;;  %6480 = vmatprep.mubr.bf16.mxu0 %v9006_v6  ;;  %v9015_v19 = vld [vmem:[%s11342_s1 + $0xe50] sm:$0xff]  }
 0x1a7   : > { %v5789_v7 = vadd.f32 %v7885_v4, %v10494_v22  ;;  %v10595_v8 = vadd.f32 %v7904_v41, %v5786_v3  ;;  %8239 = vmatpush3.bf16.msra.mxu0 %v8970_v20  ;;  %v8972_v22 = vld [vmem:[%s11342_s1 + $0xba8] sm:$0xff]   ;;  %v7951_v33 = vadd.f32 %v7950_v31, %v7949_v29  ;;  %v8986_v41 = vld [vmem:[%s11342_s1 + $0xcc0] sm:$0xff]   ;;  %v9018_v24 = vld [vmem:[%s11342_s1 + $0xcb8] sm:$0xff]  }
 0x1a8   : > { %8183 = vmatpush3.bf16.msra.mxu1 %v8972_v22  ;;  %8240 = vmatprep.subr.bf16.mxu0 %v8973_v23  ;;  %v9002_v3 = vld [vmem:[%s11342_s1 + $0xce0] sm:$0xff]   ;;  %v9017_v23 = vld [vmem:[%s11342_s1 + $0xcf8] sm:$0xff]   ;;  %v9020_v26 = vld [vmem:[%s9413_s17 + $0xc8] ss:$296 sps:$4 sm:$0xff]  }
 0x1a9   : > { %v10603_v11 = vadd.f32 %v7907_v46, %v5789_v7  ;;  %8184 = vmatprep.subr.bf16.mxu1 %v8975_v27  ;;  %v9003_v4 = vld [vmem:[%s11342_s1 + $0xca0] sm:$0xff]   ;;  %v9022_v27 = vld [vmem:[%s9413_s17 + $0xcc] ss:$296 sps:$4 sm:$0xff]  }
 0x1aa   : > { %v9007_v7 = vld [vmem:[%s11342_s1 + $0xe40] sm:$0xff]  }
 0x1ab   : > { %8241 = vmatpush3.bf16.msra.mxu0 %v8974_v25  ;;  %v9019_v25 = vld [vmem:[%s11342_s1 + $0xe58] sm:$0xff]   ;;  %v9024_v29 = vld [vmem:[%s11342_s1 + $0xdc0] sm:$0xff]  }
 0x1ac   : > { %8185 = vmatpush3.bf16.msra.mxu1 %v8976_v30  ;;  %8242 = vmatprep.subr.bf16.mxu0 %v8977_v32  ;;  %v9025_v30 = vld [vmem:[%s11342_s1 + $0xd80] sm:$0xff]  }
 0x1ad   : > { %8186 = vmatprep.subr.bf16.mxu1 %v8979_v35  ;;  %v9026_v31 = vld [vmem:[%s11342_s1 + $0xe60] sm:$0xff]   ;;  %v9029_v35 = vld [vmem:[%s11342_s1 + $0xd88] sm:$0xff]  }
 0x1ae   : > { %v9027_v32 = vld [vmem:[%s11342_s1 + $0xe20] sm:$0xff]  }
 0x1af   : > { %8243 = vmatpush3.bf16.msra.mxu0 %v8978_v34 }
 0x1b0   : > { %8187 = vmatpush3.bf16.msra.mxu1 %v8980_v36  ;;  %8244 = vmatprep.subr.bf16.mxu0 %v8981_v37  ;;  %v9030_v37 = vld [vmem:[%s11342_s1 + $0xe68] sm:$0xff]  }
 0x1b1   : > { %8216 = vmatprep.subr.bf16.mxu1 %v8986_v41 }
 0x1b3   : > { %8245 = vmatpush3.bf16.msra.mxu0 %v8985_v40  ;;  %6358 = vmatmul.mubr.bf16.vlgmr.msra.gmra.mrb[48].mxu1 %v8982_v38  ;;  %v9031_v40 = vld [vmem:[%s11342_s1 + $0xe28] sm:$0xff]  }
 0x1b4   : > { %8217 = vmatpush3.bf16.msra.mxu1 %v8987_v42  ;;  %8246 = vmatprep.subr.bf16.mxu0 %v8988_v43  ;;  %v9032_v42 = vld [vmem:[%s11342_s1 + $0xdd0] sm:$0xff]  }
 0x1b5   : > { %8218 = vmatprep.subr.bf16.mxu1 %v8990_v45  ;;  %6439 = vmatprep.mubr.bf16.mxu1 %v9022_v27  ;;  %v9033_v45 = vld [vmem:[%s11342_s1 + $0xd90] sm:$0xff]  }
 0x1b7   : > { %8247 = vmatpush3.bf16.msra.mxu0 %v8989_v44 }
 0x1b8   : > { %8219 = vmatpush3.bf16.msra.mxu1 %v8991_v47  ;;  %8248 = vmatprep.subr.bf16.mxu0 %v8992_v49  ;;  %v9035_v49 = vld [vmem:[%s11342_s1 + $0xe30] sm:$0xff]  }
 0x1b9   : > { %8220 = vmatprep.subr.bf16.mxu1 %v8994_v54  ;;  %v9039_v54 = vld [vmem:[%s11342_s1 + $0xe38] sm:$0xff]  }
 0x1bb   : > { %8249 = vmatpush3.bf16.msra.mxu0 %v8993_v52  ;;  %v9037_v52 = vld [vmem:[%s11342_s1 + $0xd98] sm:$0xff]  }
 0x1bc   : > { %8221 = vmatpush3.bf16.msra.mxu1 %v8995_v57  ;;  %8250 = vmatprep.subr.bf16.mxu0 %v8996_v58  ;;  %v9042_v57 = vld [vmem:[%s9413_s17 + $0xe0] ss:$296 sps:$4 sm:$0xff]   ;;  %v9044_v58 = vld [vmem:[%s9413_s17 + $0xe4] ss:$296 sps:$4 sm:$0xff]  }
 0x1bd   : > { %8222 = vmatprep.subr.bf16.mxu1 %v8998_v62  ;;  %v9048_v62 = vld [vmem:[%s11342_s1 + $0xda8] sm:$0xff]  }
 0x1bf   : > { %8251 = vmatpush3.bf16.msra.mxu0 %v8997_v61  ;;  %v9047_v61 = vld [vmem:[%s11342_s1 + $0xde8] sm:$0xff]  }
 0x1c0   : > { %8223 = vmatpush3.bf16.msra.mxu1 %v8999_v0  ;;  %8252 = vmatprep.subr.bf16.mxu0 %v9000_v1  ;;  %v9050_v0 = vld [vmem:[%s11342_s1 + $0xf08] sm:$0xff]  }
 0x1c1   : > { %v7924_v46 = vpop.f32.mrb[24].mxu1  ;;  %8224 = vmatprep.subr.bf16.mxu1 %v9002_v3 }
 0x1c2   : > { %v7925_v48 = vpop.f32.mrb[25].mxu1 }
 0x1c3   : > { %v7926_v50 = vadd.f32 %v7925_v48, %v7924_v46  ;;  %v7927_v51 = vpop.f32.mrb[26].mxu1  ;;  %8253 = vmatpush3.bf16.msra.mxu0 %v9001_v2  ;;  %v7990_v13 = vpop.f32.mrb[24].mxu0  ;;  %v9034_v46 = vld [vmem:[%s11342_s1 + $0xe70] sm:$0xff]  }
 0x1c4   : > { %v7928_v53 = vpop.f32.mrb[27].mxu1  ;;  %8225 = vmatpush3.bf16.msra.mxu1 %v9003_v4  ;;  %8282 = vmatprep.subr.bf16.mxu0 %v9007_v7  ;;  %v7991_v15 = vpop.f32.mrb[25].mxu0  ;;  %v9051_v2 = vld [vmem:[%s11342_s1 + $0xdf0] sm:$0xff]  }
 0x1c5   : > { %v5868_v55 = vadd.f32 %v7926_v50, %v10595_v8  ;;  %v7929_v56 = vadd.f32 %v7928_v53, %v7927_v51  ;;  %v9008_v8 = vld [vmem:[%s11342_s1 + $0xe00] sm:$0xff]   ;;  %8226 = vmatprep.subr.bf16.mxu1 %v9009_v9  ;;  %v7992_v17 = vadd.f32 %v7991_v15, %v7990_v13  ;;  %v7993_v18 = vpop.f32.mrb[26].mxu0  ;;  %v9036_v50 = vld [vmem:[%s11342_s1 + $0xdd8] sm:$0xff]   ;;  %v9052_v4 = vld [vmem:[%s11342_s1 + $0xdb0] sm:$0xff]  }
 0x1c6   : > { %6481 = vmatmul.mubr.bf16.vlgmr.msra.gmra.mrb[48].mxu0 %v9004_v5  ;;  %v7994_v20 = vpop.f32.mrb[27].mxu0  ;;  %v9038_v53 = vld [vmem:[%s11342_s1 + $0xe78] sm:$0xff]   ;;  %v9053_v7 = vld [vmem:[%s11342_s1 + $0xf50] sm:$0xff]  }
 0x1c7   : > { %v5871_v59 = vadd.f32 %v7929_v56, %v10603_v11  ;;  %v10701_v60 = vadd.f32 %v7948_v28, %v5868_v55  ;;  %8283 = vmatpush3.bf16.msra.mxu0 %v9008_v8  ;;  %v9011_v11 = vld [vmem:[%s11342_s1 + $0xe48] sm:$0xff]   ;;  %v7995_v22 = vadd.f32 %v7994_v20, %v7993_v18  ;;  %v9023_v28 = vld [vmem:[%s11342_s1 + $0xe18] sm:$0xff]   ;;  %v9040_v55 = vld [vmem:[%s11342_s1 + $0xde0] sm:$0xff]   ;;  %6562 = vmatprep.mubr.bf16.mxu0 %v9044_v58 }
 0x1c8   : > { %8227 = vmatpush3.bf16.msra.mxu1 %v9010_v10  ;;  %8284 = vmatprep.subr.bf16.mxu0 %v9011_v11  ;;  %v9041_v56 = vld [vmem:[%s11342_s1 + $0xda0] sm:$0xff]   ;;  %v9054_v9 = vld [vmem:[%s11342_s1 + $0xf10] sm:$0xff]   ;;  %v9055_v11 = vld [vmem:[%s11342_s1 + $0xdf8] sm:$0xff]  }
 0x1c9   : > { %v10709_v63 = vadd.f32 %v7951_v33, %v5871_v59  ;;  %8228 = vmatprep.subr.bf16.mxu1 %v9013_v14  ;;  %v9028_v33 = vld [vmem:[%s11342_s1 + $0xdc8] sm:$0xff]   ;;  %v9045_v59 = vld [vmem:[%s11342_s1 + $0xf40] sm:$0xff]   ;;  %v9057_v13 = vld [vmem:[%s11342_s1 + $0xf58] sm:$0xff]  }
 0x1ca   : > { %v9058_v14 = vld [vmem:[%s9413_s17 + $0xd8] ss:$296 sps:$4 sm:$0xff]   ;;  %v9060_v15 = vld [vmem:[%s9413_s17 + $0xdc] ss:$296 sps:$4 sm:$0xff]  }
 0x1cb   : > { %8285 = vmatpush3.bf16.msra.mxu0 %v9012_v12  ;;  %v9056_v12 = vld [vmem:[%s11342_s1 + $0xdb8] sm:$0xff]   ;;  %v9063_v18 = vld [vmem:[%s11342_s1 + $0xe80] sm:$0xff]  }
 0x1cc   : > { %8229 = vmatpush3.bf16.msra.mxu1 %v9014_v16  ;;  %8286 = vmatprep.subr.bf16.mxu0 %v9015_v19  ;;  %v9061_v16 = vld [vmem:[%s11342_s1 + $0xf18] sm:$0xff]   ;;  %v9064_v19 = vld [vmem:[%s11342_s1 + $0xf60] sm:$0xff]  }
 0x1cd   : > { %8230 = vmatprep.subr.bf16.mxu1 %v9017_v23  ;;  %v9065_v20 = vld [vmem:[%s11342_s1 + $0xf20] sm:$0xff]   ;;  %v9067_v23 = vld [vmem:[%s11342_s1 + $0xe88] sm:$0xff]  }
 0x1cf   : > { %8287 = vmatpush3.bf16.msra.mxu0 %v9016_v21  ;;  %v9066_v21 = vld [vmem:[%s11342_s1 + $0xec8] sm:$0xff]  }
 0x1d0   : > { %8231 = vmatpush3.bf16.msra.mxu1 %v9018_v24  ;;  %8288 = vmatprep.subr.bf16.mxu0 %v9019_v25  ;;  %v9068_v25 = vld [vmem:[%s11342_s1 + $0xf68] sm:$0xff]  }
 0x1d1   : > { %8260 = vmatprep.subr.bf16.mxu1 %v9024_v29 }
 0x1d3   : > { %8289 = vmatpush3.bf16.msra.mxu0 %v9023_v28  ;;  %6440 = vmatmul.mubr.bf16.vlgmr.msra.gmra.mrb[52].mxu1 %v9020_v26  ;;  %v9069_v28 = vld [vmem:[%s11342_s1 + $0xf28] sm:$0xff]  }
 0x1d4   : > { %8261 = vmatpush3.bf16.msra.mxu1 %v9025_v30  ;;  %8290 = vmatprep.subr.bf16.mxu0 %v9026_v31  ;;  %v9070_v30 = vld [vmem:[%s11342_s1 + $0xed0] sm:$0xff]  }
 0x1d5   : > { %8262 = vmatprep.subr.bf16.mxu1 %v9028_v33  ;;  %6521 = vmatprep.mubr.bf16.mxu1 %v9060_v15  ;;  %v9071_v33 = vld [vmem:[%s11342_s1 + $0xe90] sm:$0xff]  }
 0x1d7   : > { %8291 = vmatpush3.bf16.msra.mxu0 %v9027_v32 }
 0x1d8   : > { %8263 = vmatpush3.bf16.msra.mxu1 %v9029_v35  ;;  %8292 = vmatprep.subr.bf16.mxu0 %v9030_v37  ;;  %v9073_v37 = vld [vmem:[%s11342_s1 + $0xf30] sm:$0xff]  }
 0x1d9   : > { %8264 = vmatprep.subr.bf16.mxu1 %v9032_v42  ;;  %v9077_v42 = vld [vmem:[%s11342_s1 + $0xf38] sm:$0xff]  }
 0x1db   : > { %8293 = vmatpush3.bf16.msra.mxu0 %v9031_v40  ;;  %v9075_v40 = vld [vmem:[%s11342_s1 + $0xe98] sm:$0xff]  }
 0x1dc   : > { %8265 = vmatpush3.bf16.msra.mxu1 %v9033_v45  ;;  %8294 = vmatprep.subr.bf16.mxu0 %v9034_v46  ;;  %v9080_v45 = vld [vmem:[%s9413_s17 + $0xf0] ss:$296 sps:$4 sm:$0xff]   ;;  %v9082_v46 = vld [vmem:[%s9413_s17 + $0xf4] ss:$296 sps:$4 sm:$0xff]  }
 0x1dd   : > { %8266 = vmatprep.subr.bf16.mxu1 %v9036_v50  ;;  %v9086_v50 = vld [vmem:[%s11342_s1 + $0xea8] sm:$0xff]  }
 0x1df   : > { %8295 = vmatpush3.bf16.msra.mxu0 %v9035_v49  ;;  %v9085_v49 = vld [vmem:[%s11342_s1 + $0xee8] sm:$0xff]  }
 0x1e0   : > { %8267 = vmatpush3.bf16.msra.mxu1 %v9037_v52  ;;  %8296 = vmatprep.subr.bf16.mxu0 %v9038_v53  ;;  %v9088_v52 = vld [vmem:[%s11342_s1 + $0x1008] sm:$0xff]  }
 0x1e1   : > { %v7968_v34 = vpop.f32.mrb[28].mxu1  ;;  %8268 = vmatprep.subr.bf16.mxu1 %v9040_v55 }
 0x1e2   : > { %v7969_v36 = vpop.f32.mrb[29].mxu1 }
 0x1e3   : > { %v7970_v38 = vadd.f32 %v7969_v36, %v7968_v34  ;;  %v7971_v39 = vpop.f32.mrb[30].mxu1  ;;  %8297 = vmatpush3.bf16.msra.mxu0 %v9039_v54  ;;  %v8034_v1 = vpop.f32.mrb[28].mxu0  ;;  %v9072_v34 = vld [vmem:[%s11342_s1 + $0xf70] sm:$0xff]  }
 0x1e4   : > { %v7972_v41 = vpop.f32.mrb[31].mxu1  ;;  %8269 = vmatpush3.bf16.msra.mxu1 %v9041_v56  ;;  %8326 = vmatprep.subr.bf16.mxu0 %v9045_v59  ;;  %v8035_v3 = vpop.f32.mrb[29].mxu0  ;;  %v9089_v54 = vld [vmem:[%s11342_s1 + $0xef0] sm:$0xff]  }
 0x1e5   : > { %v5950_v43 = vadd.f32 %v7970_v38, %v10701_v60  ;;  %v7973_v44 = vadd.f32 %v7972_v41, %v7971_v39  ;;  %v9046_v60 = vld [vmem:[%s11342_s1 + $0xf00] sm:$0xff]   ;;  %8270 = vmatprep.subr.bf16.mxu1 %v9047_v61  ;;  %v8036_v5 = vadd.f32 %v8035_v3, %v8034_v1  ;;  %v8037_v6 = vpop.f32.mrb[30].mxu0  ;;  %v9074_v38 = vld [vmem:[%s11342_s1 + $0xed8] sm:$0xff]   ;;  %v9090_v56 = vld [vmem:[%s11342_s1 + $0xeb0] sm:$0xff]  }
 0x1e6   : > { %6563 = vmatmul.mubr.bf16.vlgmr.msra.gmra.mrb[52].mxu0 %v9042_v57  ;;  %v8038_v8 = vpop.f32.mrb[31].mxu0  ;;  %v9076_v41 = vld [vmem:[%s11342_s1 + $0xf78] sm:$0xff]   ;;  %v9091_v59 = vld [vmem:[%s11342_s1 + $0x1050] sm:$0xff]  }
 0x1e7   : > { %v5953_v47 = vadd.f32 %v7973_v44, %v10709_v63  ;;  %v10807_v48 = vadd.f32 %v7992_v17, %v5950_v43  ;;  %8327 = vmatpush3.bf16.msra.mxu0 %v9046_v60  ;;  %v9049_v63 = vld [vmem:[%s11342_s1 + $0xf48] sm:$0xff]   ;;  %v8039_v10 = vadd.f32 %v8038_v8, %v8037_v6  ;;  %v9062_v17 = vld [vmem:[%s11342_s1 + $0xec0] sm:$0xff]   ;;  %6644 = vmatprep.mubr.bf16.mxu0 %v9082_v46  ;;  %v9092_v61 = vld [vmem:[%s11342_s1 + $0x1010] sm:$0xff]  }
 0x1e8   : > { %8271 = vmatpush3.bf16.msra.mxu1 %v9048_v62  ;;  %8328 = vmatprep.subr.bf16.mxu0 %v9049_v63  ;;  %v9078_v43 = vld [vmem:[%s11342_s1 + $0xee0] sm:$0xff]   ;;  %v9093_v63 = vld [vmem:[%s11342_s1 + $0xef8] sm:$0xff]   ;;  %v9098_v3 = vld [vmem:[%s9413_s17 + $0xec] ss:$296 sps:$4 sm:$0xff]  }
 0x1e9   : > { %v10815_v51 = vadd.f32 %v7995_v22, %v5953_v47  ;;  %8272 = vmatprep.subr.bf16.mxu1 %v9051_v2  ;;  %v9079_v44 = vld [vmem:[%s11342_s1 + $0xea0] sm:$0xff]   ;;  %v9095_v1 = vld [vmem:[%s11342_s1 + $0x1058] sm:$0xff]   ;;  %v9096_v2 = vld [vmem:[%s9413_s17 + $0xe8] ss:$296 sps:$4 sm:$0xff]  }
 0x1ea   : > { %v9083_v47 = vld [vmem:[%s11342_s1 + $0x1040] sm:$0xff]  }
 0x1eb   : > { %8329 = vmatpush3.bf16.msra.mxu0 %v9050_v0  ;;  %v9094_v0 = vld [vmem:[%s11342_s1 + $0xeb8] sm:$0xff]   ;;  %v9101_v6 = vld [vmem:[%s11342_s1 + $0xf80] sm:$0xff]  }
 0x1ec   : > { %8273 = vmatpush3.bf16.msra.mxu1 %v9052_v4  ;;  %8330 = vmatprep.subr.bf16.mxu0 %v9053_v7  ;;  %v9099_v4 = vld [vmem:[%s11342_s1 + $0x1018] sm:$0xff]   ;;  %v9102_v7 = vld [vmem:[%s11342_s1 + $0x1060] sm:$0xff]  }
 0x1ed   : > { %8274 = vmatprep.subr.bf16.mxu1 %v9055_v11  ;;  %v9103_v8 = vld [vmem:[%s11342_s1 + $0x1020] sm:$0xff]   ;;  %v9105_v11 = vld [vmem:[%s11342_s1 + $0xf88] sm:$0xff]  }
 0x1ef   : > { %8331 = vmatpush3.bf16.msra.mxu0 %v9054_v9  ;;  %v9104_v9 = vld [vmem:[%s11342_s1 + $0xfc8] sm:$0xff]  }
 0x1f0   : > { %8275 = vmatpush3.bf16.msra.mxu1 %v9056_v12  ;;  %8332 = vmatprep.subr.bf16.mxu0 %v9057_v13  ;;  %v9106_v13 = vld [vmem:[%s11342_s1 + $0x1068] sm:$0xff]  }
 0x1f1   : > { %8304 = vmatprep.subr.bf16.mxu1 %v9062_v17 }
 0x1f3   : > { %8333 = vmatpush3.bf16.msra.mxu0 %v9061_v16  ;;  %6522 = vmatmul.mubr.bf16.vlgmr.msra.gmra.mrb[56].mxu1 %v9058_v14  ;;  %v9107_v16 = vld [vmem:[%s11342_s1 + $0x1028] sm:$0xff]  }
 0x1f4   : > { %8305 = vmatpush3.bf16.msra.mxu1 %v9063_v18  ;;  %8334 = vmatprep.subr.bf16.mxu0 %v9064_v19  ;;  %v9108_v18 = vld [vmem:[%s11342_s1 + $0xfd0] sm:$0xff]  }
 0x1f5   : > { %8306 = vmatprep.subr.bf16.mxu1 %v9066_v21  ;;  %6603 = vmatprep.mubr.bf16.mxu1 %v9098_v3  ;;  %v9109_v21 = vld [vmem:[%s11342_s1 + $0xf90] sm:$0xff]  }
 0x1f7   : > { %8335 = vmatpush3.bf16.msra.mxu0 %v9065_v20 }
 0x1f8   : > { %8307 = vmatpush3.bf16.msra.mxu1 %v9067_v23  ;;  %8336 = vmatprep.subr.bf16.mxu0 %v9068_v25  ;;  %v9111_v25 = vld [vmem:[%s11342_s1 + $0x1030] sm:$0xff]  }
 0x1f9   : > { %8308 = vmatprep.subr.bf16.mxu1 %v9070_v30  ;;  %v9115_v30 = vld [vmem:[%s11342_s1 + $0x1038] sm:$0xff]  }
 0x1fb   : > { %8337 = vmatpush3.bf16.msra.mxu0 %v9069_v28  ;;  %v9113_v28 = vld [vmem:[%s11342_s1 + $0xf98] sm:$0xff]  }
 0x1fc   : > { %8309 = vmatpush3.bf16.msra.mxu1 %v9071_v33  ;;  %8338 = vmatprep.subr.bf16.mxu0 %v9072_v34  ;;  %v9118_v33 = vld [vmem:[%s9413_s17 + $0x100] ss:$296 sps:$4 sm:$0xff]   ;;  %v9120_v34 = vld [vmem:[%s9413_s17 + $0x104] ss:$296 sps:$4 sm:$0xff]  }
 0x1fd   : > { %8310 = vmatprep.subr.bf16.mxu1 %v9074_v38  ;;  %v9124_v38 = vld [vmem:[%s11342_s1 + $0xfa8] sm:$0xff]  }
 0x1ff   : > { %8339 = vmatpush3.bf16.msra.mxu0 %v9073_v37  ;;  %v9123_v37 = vld [vmem:[%s11342_s1 + $0xfe8] sm:$0xff]  }
 0x200   : > { %8311 = vmatpush3.bf16.msra.mxu1 %v9075_v40  ;;  %8340 = vmatprep.subr.bf16.mxu0 %v9076_v41  ;;  %v9126_v40 = vld [vmem:[%s11342_s1 + $0x1108] sm:$0xff]  }
 0x201   : > { %v8012_v22 = vpop.f32.mrb[32].mxu1  ;;  %8312 = vmatprep.subr.bf16.mxu1 %v9078_v43 }
 0x202   : > { %v8013_v24 = vpop.f32.mrb[33].mxu1 }
 0x203   : > { %v8014_v26 = vadd.f32 %v8013_v24, %v8012_v22  ;;  %v8015_v27 = vpop.f32.mrb[34].mxu1  ;;  %8341 = vmatpush3.bf16.msra.mxu0 %v9077_v42  ;;  %v9110_v22 = vld [vmem:[%s11342_s1 + $0x1070] sm:$0xff]  }
 0x204   : > { %v8016_v29 = vpop.f32.mrb[35].mxu1  ;;  %8313 = vmatpush3.bf16.msra.mxu1 %v9079_v44  ;;  %8370 = vmatprep.subr.bf16.mxu0 %v9083_v47  ;;  %v9127_v42 = vld [vmem:[%s11342_s1 + $0xff0] sm:$0xff]  }
 0x205   : > { %v6032_v31 = vadd.f32 %v8014_v26, %v10807_v48  ;;  %v8017_v32 = vadd.f32 %v8016_v29, %v8015_v27  ;;  %v9084_v48 = vld [vmem:[%s11342_s1 + $0x1000] sm:$0xff]   ;;  %8314 = vmatprep.subr.bf16.mxu1 %v9085_v49  ;;  %v9112_v26 = vld [vmem:[%s11342_s1 + $0xfd8] sm:$0xff]   ;;  %v9128_v44 = vld [vmem:[%s11342_s1 + $0xfb0] sm:$0xff]  }
 0x206   : > { %6645 = vmatmul.mubr.bf16.vlgmr.msra.gmra.mrb[56].mxu0 %v9080_v45  ;;  %v9114_v29 = vld [vmem:[%s11342_s1 + $0x1078] sm:$0xff]   ;;  %v9129_v47 = vld [vmem:[%s11342_s1 + $0x1150] sm:$0xff]  }
 0x207   : > { %v6035_v35 = vadd.f32 %v8017_v32, %v10815_v51  ;;  %v10913_v36 = vadd.f32 %v8036_v5, %v6032_v31  ;;  %8371 = vmatpush3.bf16.msra.mxu0 %v9084_v48  ;;  %v9087_v51 = vld [vmem:[%s11342_s1 + $0x1048] sm:$0xff]   ;;  %v9100_v5 = vld [vmem:[%s11342_s1 + $0xfc0] sm:$0xff]   ;;  %6726 = vmatprep.mubr.bf16.mxu0 %v9120_v34  ;;  %v9130_v49 = vld [vmem:[%s11342_s1 + $0x1110] sm:$0xff]  }
 0x208   : > { %8315 = vmatpush3.bf16.msra.mxu1 %v9086_v50  ;;  %8372 = vmatprep.subr.bf16.mxu0 %v9087_v51  ;;  %v9116_v31 = vld [vmem:[%s11342_s1 + $0xfe0] sm:$0xff]   ;;  %v9131_v51 = vld [vmem:[%s11342_s1 + $0xff8] sm:$0xff]  }
 0x209   : > { %v10921_v39 = vadd.f32 %v8039_v10, %v6035_v35  ;;  %8316 = vmatprep.subr.bf16.mxu1 %v9089_v54  ;;  %v9117_v32 = vld [vmem:[%s11342_s1 + $0xfa0] sm:$0xff]  }
 0x20a   : > { %v9121_v35 = vld [vmem:[%s11342_s1 + $0x1140] sm:$0xff]  }
 0x20b   : > { %8373 = vmatpush3.bf16.msra.mxu0 %v9088_v52  ;;  %v9132_v52 = vld [vmem:[%s11342_s1 + $0xfb8] sm:$0xff]  }
 0x20c   : > { %v8078_v53 = vpop.f32.mrb[32].mxu0  ;;  %8317 = vmatpush3.bf16.msra.mxu1 %v9090_v56  ;;  %8374 = vmatprep.subr.bf16.mxu0 %v9091_v59  ;;  %v9134_v54 = vld [vmem:[%s9413_s17 + $0xf8] ss:$296 sps:$4 sm:$0xff]  }
 0x20d   : > { %v8079_v55 = vpop.f32.mrb[33].mxu0  ;;  %8318 = vmatprep.subr.bf16.mxu1 %v9093_v63  ;;  %v9137_v56 = vld [vmem:[%s11342_s1 + $0x1118] sm:$0xff]   ;;  %v9140_v59 = vld [vmem:[%s11342_s1 + $0x1160] sm:$0xff]   ;;  %v9143_v63 = vld [vmem:[%s11342_s1 + $0x1088] sm:$0xff]  }
 0x20e   : > { %v8080_v57 = vadd.f32 %v8079_v55, %v8078_v53  ;;  %v8081_v58 = vpop.f32.mrb[34].mxu0  ;;  %v9133_v53 = vld [vmem:[%s11342_s1 + $0x1158] sm:$0xff]  }
 0x20f   : > { %v8082_v60 = vpop.f32.mrb[35].mxu0  ;;  %8375 = vmatpush3.bf16.msra.mxu0 %v9092_v61  ;;  %v9136_v55 = vld [vmem:[%s9413_s17 + $0xfc] ss:$296 sps:$4 sm:$0xff]   ;;  %v9142_v61 = vld [vmem:[%s11342_s1 + $0x10c8] sm:$0xff]  }
 0x210   : > { %v8083_v62 = vadd.f32 %v8082_v60, %v8081_v58  ;;  %8319 = vmatpush3.bf16.msra.mxu1 %v9094_v0  ;;  %8376 = vmatprep.subr.bf16.mxu0 %v9095_v1  ;;  %v9139_v58 = vld [vmem:[%s11342_s1 + $0x1080] sm:$0xff]   ;;  %v9144_v1 = vld [vmem:[%s11342_s1 + $0x1168] sm:$0xff]  }
 0x211   : > { %8348 = vmatprep.subr.bf16.mxu1 %v9100_v5  ;;  %v9141_v60 = vld [vmem:[%s11342_s1 + $0x1120] sm:$0xff]  }
 0x213   : > { %8377 = vmatpush3.bf16.msra.mxu0 %v9099_v4  ;;  %6604 = vmatmul.mubr.bf16.vlgmr.msra.gmra.mrb[60].mxu1 %v9096_v2  ;;  %v9145_v4 = vld [vmem:[%s11342_s1 + $0x1128] sm:$0xff]  }
 0x214   : > { %8349 = vmatpush3.bf16.msra.mxu1 %v9101_v6  ;;  %8378 = vmatprep.subr.bf16.mxu0 %v9102_v7  ;;  %v9146_v6 = vld [vmem:[%s11342_s1 + $0x10d0] sm:$0xff]  }
 0x215   : > { %8350 = vmatprep.subr.bf16.mxu1 %v9104_v9  ;;  %6685 = vmatprep.mubr.bf16.mxu1 %v9136_v55  ;;  %v9147_v9 = vld [vmem:[%s11342_s1 + $0x1090] sm:$0xff]  }
 0x217   : > { %8379 = vmatpush3.bf16.msra.mxu0 %v9103_v8 }
 0x218   : > { %8351 = vmatpush3.bf16.msra.mxu1 %v9105_v11  ;;  %8380 = vmatprep.subr.bf16.mxu0 %v9106_v13  ;;  %v9149_v13 = vld [vmem:[%s11342_s1 + $0x1130] sm:$0xff]  }
 0x219   : > { %8352 = vmatprep.subr.bf16.mxu1 %v9108_v18  ;;  %v9153_v18 = vld [vmem:[%s11342_s1 + $0x1138] sm:$0xff]  }
 0x21b   : > { %8381 = vmatpush3.bf16.msra.mxu0 %v9107_v16  ;;  %v9151_v16 = vld [vmem:[%s11342_s1 + $0x1098] sm:$0xff]  }
 0x21c   : > { %8353 = vmatpush3.bf16.msra.mxu1 %v9109_v21  ;;  %8382 = vmatprep.subr.bf16.mxu0 %v9110_v22  ;;  %v9156_v21 = vld [vmem:[%s9413_s17 + $0x110] ss:$296 sps:$4 sm:$0xff]   ;;  %v9158_v22 = vld [vmem:[%s9413_s17 + $0x114] ss:$296 sps:$4 sm:$0xff]  }
 0x21d   : > { %8354 = vmatprep.subr.bf16.mxu1 %v9112_v26  ;;  %v9161_v26 = vld [vmem:[%s11342_s1 + $0x10a8] sm:$0xff]  }
 0x21f   : > { %8383 = vmatpush3.bf16.msra.mxu0 %v9111_v25  ;;  %v9160_v25 = vld [vmem:[%s11342_s1 + $0x10e8] sm:$0xff]  }
 0x220   : > { %8355 = vmatpush3.bf16.msra.mxu1 %v9113_v28  ;;  %8384 = vmatprep.subr.bf16.mxu0 %v9114_v29  ;;  %v9163_v28 = vld [vmem:[%s11342_s1 + $0x10f0] sm:$0xff]  }
 0x221   : > { %8356 = vmatprep.subr.bf16.mxu1 %v9116_v31  ;;  %v9164_v29 = vld [vmem:[%s11342_s1 + $0x10b0] sm:$0xff]  }
 0x222   : > { %v9165_v31 = vld [vmem:[%s11342_s1 + $0x1210] sm:$0xff]  }
 0x223   : > { %v8056_v10 = vpop.f32.mrb[36].mxu1  ;;  %8385 = vmatpush3.bf16.msra.mxu0 %v9115_v30 }
 0x224   : > { %v8057_v12 = vpop.f32.mrb[37].mxu1  ;;  %8357 = vmatpush3.bf16.msra.mxu1 %v9117_v32  ;;  %8414 = vmatprep.subr.bf16.mxu0 %v9121_v35 }
 0x225   : > { %v8058_v14 = vadd.f32 %v8057_v12, %v8056_v10  ;;  %v8059_v15 = vpop.f32.mrb[38].mxu1  ;;  %8358 = vmatprep.subr.bf16.mxu1 %v9123_v37  ;;  %v9148_v10 = vld [vmem:[%s11342_s1 + $0x1170] sm:$0xff]  }
 0x226   : > { %v8060_v17 = vpop.f32.mrb[39].mxu1  ;;  %6727 = vmatmul.mubr.bf16.vlgmr.msra.gmra.mrb[60].mxu0 %v9118_v33  ;;  %v9166_v33 = vld [vmem:[%s11342_s1 + $0x10f8] sm:$0xff]  }
 0x227   : > { %v6114_v19 = vadd.f32 %v8058_v14, %v10913_v36  ;;  %v8061_v20 = vadd.f32 %v8060_v17, %v8059_v15  ;;  %v9122_v36 = vld [vmem:[%s11342_s1 + $0x1100] sm:$0xff]   ;;  %v9150_v14 = vld [vmem:[%s11342_s1 + $0x10d8] sm:$0xff]   ;;  %6808 = vmatprep.mubr.bf16.mxu0 %v9158_v22 }
 0x228   : > { %8415 = vmatpush3.bf16.msra.mxu0 %v9122_v36  ;;  %8359 = vmatpush3.bf16.msra.mxu1 %v9124_v38  ;;  %v9152_v17 = vld [vmem:[%s11342_s1 + $0x1178] sm:$0xff]   ;;  %v9168_v38 = vld [vmem:[%s9413_s17 + $0x108] ss:$296 sps:$4 sm:$0xff]  }
 0x229   : > { %v6117_v23 = vadd.f32 %v8061_v20, %v10921_v39  ;;  %v11019_v24 = vadd.f32 %v8080_v57, %v6114_v19  ;;  %v9125_v39 = vld [vmem:[%s11342_s1 + $0x1148] sm:$0xff]   ;;  %8360 = vmatprep.subr.bf16.mxu1 %v9127_v42  ;;  %v9138_v57 = vld [vmem:[%s11342_s1 + $0x10c0] sm:$0xff]   ;;  %v9167_v36 = vld [vmem:[%s11342_s1 + $0x10b8] sm:$0xff]  }
 0x22a   : > { %8416 = vmatprep.subr.bf16.mxu0 %v9125_v39  ;;  %v9154_v19 = vld [vmem:[%s11342_s1 + $0x10e0] sm:$0xff]   ;;  %v9170_v39 = vld [vmem:[%s9413_s17 + $0x10c] ss:$296 sps:$4 sm:$0xff]  }
 0x22b   : > { %v11027_v27 = vadd.f32 %v8083_v62, %v6117_v23  ;;  %v9155_v20 = vld [vmem:[%s11342_s1 + $0x10a0] sm:$0xff]   ;;  %v9266_v23 = vmov 0  }
 0x22c   : > { %v8122_v41 = vpop.f32.mrb[36].mxu0  ;;  %8417 = vmatpush3.bf16.msra.mxu0 %v9126_v40  ;;  %8361 = vmatpush3.bf16.msra.mxu1 %v9128_v44  ;;  %v9172_v42 = vld [vmem:[%s11342_s1 + $0x11c0] sm:$0xff]   ;;  %v9175_v44 = vld [vmem:[%s11342_s1 + $0x11c8] sm:$0xff]  }
 0x22d   : > { %v8123_v43 = vpop.f32.mrb[37].mxu0  ;;  %8418 = vmatprep.subr.bf16.mxu0 %v9129_v47  ;;  %8362 = vmatprep.subr.bf16.mxu1 %v9131_v51  ;;  %v9178_v47 = vld [vmem:[%s11342_s1 + $0x11d0] sm:$0xff]  }
 0x22e   : > { %v8124_v45 = vadd.f32 %v8123_v43, %v8122_v41  ;;  %v8125_v46 = vpop.f32.mrb[38].mxu0  ;;  %v9171_v41 = vld [vmem:[%s11342_s1 + $0x1218] sm:$0xff]   ;;  %v9173_v43 = vld [vmem:[%s11342_s1 + $0x1180] sm:$0xff]  }
 0x22f   : > { %v8126_v48 = vpop.f32.mrb[39].mxu0 }
 0x230   : > { %v8127_v50 = vadd.f32 %v8126_v48, %v8125_v46  ;;  %8419 = vmatpush3.bf16.msra.mxu0 %v9130_v49  ;;  %8363 = vmatpush3.bf16.msra.mxu1 %v9132_v52  ;;  %v9176_v46 = vld [vmem:[%s11342_s1 + $0x1188] sm:$0xff]   ;;  %v9181_v52 = vld [vmem:[%s11342_s1 + $0x11d8] sm:$0xff]  }
 0x231   : > { %8420 = vmatprep.subr.bf16.mxu0 %v9133_v53  ;;  %8392 = vmatprep.subr.bf16.mxu1 %v9138_v57  ;;  %v9177_v48 = vld [vmem:[%s11342_s1 + $0x1228] sm:$0xff]  }
 0x233   : > { %6686 = vmatmul.mubr.bf16.vlgmr.msra.gmra.mrb[64].mxu1 %v9134_v54 }
 0x234   : > { %8421 = vmatpush3.bf16.msra.mxu0 %v9137_v56  ;;  %8393 = vmatpush3.bf16.msra.mxu1 %v9139_v58  ;;  %v9180_v56 = vld [vmem:[%s11342_s1 + $0x1230] sm:$0xff]  }
 0x235   : > { %8422 = vmatprep.subr.bf16.mxu0 %v9140_v59  ;;  %8394 = vmatprep.subr.bf16.mxu1 %v9142_v61  ;;  %v9182_v59 = vld [vmem:[%s11342_s1 + $0x1198] sm:$0xff]  }
 0x236   : > { %6767 = vmatprep.mubr.bf16.mxu1 %v9170_v39 }
 0x238   : > { %8423 = vmatpush3.bf16.msra.mxu0 %v9141_v60  ;;  %8395 = vmatpush3.bf16.msra.mxu1 %v9143_v63  ;;  %v9184_v60 = vld [vmem:[%s11342_s1 + $0x11e0] sm:$0xff]   ;;  %v9183_v63 = vld [vmem:[%s11342_s1 + $0x1238] sm:$0xff]  }
 0x239   : > { %8424 = vmatprep.subr.bf16.mxu0 %v9144_v1  ;;  %8396 = vmatprep.subr.bf16.mxu1 %v9146_v6  ;;  %v9185_v1 = vld [vmem:[%s11342_s1 + $0x11a0] sm:$0xff]   ;;  %v9189_v6 = vld [vmem:[%s11342_s1 + $0x1248] sm:$0xff]  }
 0x23c   : > { %8425 = vmatpush3.bf16.msra.mxu0 %v9145_v4  ;;  %8397 = vmatpush3.bf16.msra.mxu1 %v9147_v9  ;;  %v9188_v4 = vld [vmem:[%s11342_s1 + $0x11a8] sm:$0xff]   ;;  %v9193_v9 = vld [vmem:[%s11342_s1 + $0x11f8] sm:$0xff]  }
 0x23d   : > { %8426 = vmatprep.subr.bf16.mxu0 %v9148_v10  ;;  %8398 = vmatprep.subr.bf16.mxu1 %v9150_v14  ;;  %v9199_v10 = vld [vmem:[%s9413_s17 + $0x124] ss:$296 sps:$4 sm:$0xff]  }
 0x240   : > { %8427 = vmatpush3.bf16.msra.mxu0 %v9149_v13  ;;  %8399 = vmatpush3.bf16.msra.mxu1 %v9151_v16 }
 0x241   : > { %8428 = vmatprep.subr.bf16.mxu0 %v9152_v17  ;;  %8400 = vmatprep.subr.bf16.mxu1 %v9154_v19  ;;  %v9195_v17 = vld [vmem:[%s9413_s17 + $0x118] ss:$296 sps:$4 sm:$0xff]  }
 0x244   : > { %v8100_v62 = vpop.f32.mrb[40].mxu1  ;;  %8429 = vmatpush3.bf16.msra.mxu0 %v9153_v18  ;;  %8401 = vmatpush3.bf16.msra.mxu1 %v9155_v20  ;;  %v9198_v18 = vld [vmem:[%s11342_s1 + $0x1258] sm:$0xff]  }
 0x245   : > { %v8101_v0 = vpop.f32.mrb[41].mxu1  ;;  %6858 = vmatprep.subr.bf16.mxu0 %v9266_v23  ;;  %8402 = vmatprep.subr.bf16.mxu1 %v9160_v25 }
 0x246   : > { %v8102_v2 = vadd.f32 %v8101_v0, %v8100_v62  ;;  %v8103_v3 = vpop.f32.mrb[42].mxu1 }
 0x247   : > { %v8104_v5 = vpop.f32.mrb[43].mxu1  ;;  %6809 = vmatmul.mubr.bf16.vlgmr.msra.gmra.mrb[64].mxu0 %v9156_v21  ;;  %v9201_v21 = vld [vmem:[%s9413_s17 + $0x120] ss:$296 sps:$4 sm:$0xff]  }
 0x248   : > { %v6196_v7 = vadd.f32 %v8102_v2, %v11019_v24  ;;  %v8105_v8 = vadd.f32 %v8104_v5, %v8103_v3  ;;  %v9159_v24 = vld [vmem:[%s11342_s1 + $0x1200] sm:$0xff]   ;;  %8403 = vmatpush3.bf16.msra.mxu1 %v9161_v26  ;;  %v9187_v2 = vld [vmem:[%s11342_s1 + $0x11e8] sm:$0xff]   ;;  %v9190_v5 = vld [vmem:[%s11342_s1 + $0x11f0] sm:$0xff]   ;;  %7662 = vmatprep.mubr.msk.bf16.mxu0 %vm5378_vm0, %v9199_v10 }
 0x249   : > { %6859 = vmatpush1.bf16.msra.mxu0 %v9159_v24  ;;  %8404 = vmatprep.subr.bf16.mxu1 %v9163_v28  ;;  %v9186_v3 = vld [vmem:[%s11342_s1 + $0x1240] sm:$0xff]  }
 0x24a   : > { %v6199_v11 = vadd.f32 %v8105_v8, %v11027_v27  ;;  %v11125_v12 = vadd.f32 %v8124_v45, %v6196_v7  ;;  %v9162_v27 = vld [vmem:[%s11342_s1 + $0x1208] sm:$0xff]   ;;  %6860 = vmatprep.subr.bf16.mxu0 %v9266_v23  ;;  %v9174_v45 = vld [vmem:[%s11342_s1 + $0x1220] sm:$0xff]   ;;  %v9191_v8 = vld [vmem:[%s11342_s1 + $0x11b0] sm:$0xff]  }
 0x24b   : > { %v9197_v7 = vld [vmem:[%s9413_s17 + $0x11c] ss:$296 sps:$4 sm:$0xff]   ;;  %s215_s17 = sand.u32 1, %s9256_s19  }
 0x24c   : > { %v11133_v15 = vadd.f32 %v8127_v50, %v6199_v11  ;;  %8405 = vmatpush3.bf16.msra.mxu1 %v9164_v29  ;;  %v9179_v50 = vld [vmem:[%s11342_s1 + $0x1190] sm:$0xff]   ;;  %s8458_s13 = smul.u32 24, %s215_s17  ;;  %s11300_s22 = scalar_lea.sflag [#allocation3], %s215_s17 }
 0x24d   : > { %6861 = vmatpush1.bf16.msra.mxu0 %v9162_v27  ;;  %8406 = vmatprep.subr.bf16.mxu1 %v9166_v33  ;;  %v9192_v11 = vld [vmem:[%s11342_s1 + $0x1250] sm:$0xff]  }
 0x24e   : > { %v8166_v30 = vpop.f32.mrb[40].mxu0  ;;  %6862 = vmatprep.subr.bf16.mxu0 %v9266_v23  ;;  %s217_s6 = scalar_lea.vmem [#allocation2], %s8458_s13  ;;  %s9206_s13 = sshll.u32 %s9267_s15, 4  ;;  %s9207_s13 = int_to_ptr.vmem [resolvable:$false] %s9206_s13 }
 0x24f   : > { %v8167_v32 = vpop.f32.mrb[41].mxu0  ;;  %s6932_s9 = sshll.u32 %s217_s6, 4  ;;  %s9208_s16 = scalar_lea.vmem %s9207_s13, 768  ;;  %s11293_s9 = int_to_ptr.vmem [resolvable:$true] %s6932_s9 }
 0x250   : > { %v8168_v34 = vadd.f32 %v8167_v32, %v8166_v30  ;;  %v8169_v35 = vpop.f32.mrb[42].mxu0  ;;  %8407 = vmatpush3.bf16.msra.mxu1 %v9167_v36  ;;  %s9202_s14 = scalar_lea.vmem %s11293_s9, 384  ;;  %p9209_p0 = scmp.lt.s32.totalorder %s11293_s9, %s9207_s13 }
 0x251   : > { %v8170_v37 = vpop.f32.mrb[43].mxu0  ;;  %6863 = vmatpush1.bf16.msra.mxu0 %v9165_v31  ;;  %8436 = vmatprep.subr.bf16.mxu1 %v9172_v42  ;;  %p9203_p11 = scmp.ne.s32.totalorder %s11293_s9, %s9202_s14  ;;  %p9210_p1 = scmp.lt.s32.totalorder %s9208_s16, %s9202_s14 }
 0x252   : > { %v8171_v40 = vadd.f32 %v8170_v37, %v8169_v35  ;;  %6864 = vmatprep.subr.bf16.mxu0 %v9266_v23 }
 0x253   : > { %6768 = vmatmul.mubr.bf16.vlgmr.msra.gmra.mrb[68].mxu1 %v9168_v38  ;;  %p9204_p12 = pnand %p9203_p11, %p9338_p5  ;;  %p9211_p2 = por %p9210_p1, %p9209_p0 }
 0x254   : > { %8437 = vmatpush3.bf16.msra.mxu1 %v9173_v43  ;;  %6849 = vmatprep.mubr.bf16.mxu1 %v9197_v7 }
 0x255   : > { %6865 = vmatpush1.bf16.msra.mxu0 %v9171_v41  ;;  %8438 = vmatprep.subr.bf16.mxu1 %v9175_v44  ;;  %p9205_p13 = pneg %p9204_p12 }
 0x256   : > { %6866 = vmatprep.subr.bf16.mxu0 %v9266_v23 }
 0x257   : > { %p9212_p3 = pnand %p9211_p2, %p9205_p13 }
 0x258   : > { %8439 = vmatpush3.bf16.msra.mxu1 %v9176_v46 }
 0x259   : > { %6867 = vmatpush1.bf16.msra.mxu0 %v9174_v45  ;;  %8440 = vmatprep.subr.bf16.mxu1 %v9178_v47 }
 0x25a   : > { %6868 = vmatprep.subr.bf16.mxu0 %v9266_v23 }
 0x25c   : > { %8441 = vmatpush3.bf16.msra.mxu1 %v9179_v50 }
 0x25d   : > { %6869 = vmatpush1.bf16.msra.mxu0 %v9177_v48  ;;  %8442 = vmatprep.subr.bf16.mxu1 %v9181_v52 }
 0x25e   : > { %6870 = vmatprep.subr.bf16.mxu0 %v9266_v23 }
 0x260   : > { %8443 = vmatpush3.bf16.msra.mxu1 %v9182_v59 }
 0x261   : > { %6871 = vmatpush1.bf16.msra.mxu0 %v9180_v56  ;;  %8444 = vmatprep.subr.bf16.mxu1 %v9184_v60 }
 0x262   : > { %6872 = vmatprep.subr.bf16.mxu0 %v9266_v23 }
 0x264   : > { %v8144_v49 = vpop.f32.mrb[44].mxu1  ;;  %8445 = vmatpush3.bf16.msra.mxu1 %v9185_v1 }
 0x265   : > { %v8145_v51 = vpop.f32.mrb[45].mxu1  ;;  %6873 = vmatpush1.bf16.msra.mxu0 %v9183_v63  ;;  %8446 = vmatprep.subr.bf16.mxu1 %v9187_v2 }
 0x266   : > { %v8146_v53 = vadd.f32 %v8145_v51, %v8144_v49  ;;  %v8147_v54 = vpop.f32.mrb[46].mxu1  ;;  %6874 = vmatprep.subr.bf16.mxu0 %v9266_v23 }
 0x267   : > { %v8148_v55 = vpop.f32.mrb[47].mxu1 }
 0x268   : > { %v6278_v57 = vadd.f32 %v8146_v53, %v11125_v12  ;;  %v8149_v58 = vadd.f32 %v8148_v55, %v8147_v54  ;;  %8447 = vmatpush3.bf16.msra.mxu1 %v9188_v4  ;;  %v9194_v12 = vld [vmem:[%s11342_s1 + $0x11b8] sm:$0xff]  }
 0x269   : > { %6875 = vmatpush1.bf16.msra.mxu0 %v9186_v3  ;;  %8448 = vmatprep.subr.bf16.mxu1 %v9190_v5 }
 0x26a   : > { %v6281_v61 = vadd.f32 %v8149_v58, %v11133_v15  ;;  %v6319_v62 = vadd.f32 %v8168_v34, %v6278_v57  ;;  %6876 = vmatprep.subr.bf16.mxu0 %v9266_v23 }
 0x26c   : > { %v6322_v0 = vadd.f32 %v8171_v40, %v6281_v61  ;;  %8449 = vmatpush3.bf16.msra.mxu1 %v9191_v8 }
 0x26d   : > { %6877 = vmatpush1.bf16.msra.mxu0 %v9189_v6  ;;  %8450 = vmatprep.subr.bf16.mxu1 %v9193_v9 }
 0x26e   : > { %6878 = vmatprep.subr.bf16.mxu0 %v9266_v23 }
 0x270   : > { %8451 = vmatpush3.bf16.msra.mxu1 %v9194_v12 }
 0x271   : > { %6879 = vmatpush1.bf16.msra.mxu0 %v9192_v11 }
 0x272   : > { %6880 = vmatprep.subr.bf16.mxu0 %v9266_v23 }
 0x273   : > { %6850 = vmatmul.mubr.bf16.vlgmr.msra.gmra.mrb[72].mxu1 %v9195_v17 }
 0x275   : > { %6881 = vmatpush1.bf16.msra.mxu0 %v9198_v18 }
 0x278   : > { %v8210_v13 = vpop.f32.mrb[44].mxu0  ;;  %6891 = vmatmul.mubr.bf16.vlgmr.msra.gmra.mrb[68].mxu0 %v9201_v21 }
 0x279   : > { %v8211_v14 = vpop.f32.mrb[45].mxu0 }
 0x27a   : > { %v8212_v15 = vadd.f32 %v8211_v14, %v8210_v13  ;;  %v8213_v16 = vpop.f32.mrb[46].mxu0 }
 0x27b   : > { %v8214_v19 = vpop.f32.mrb[47].mxu0 }
 0x27c   : > { %v8215_v20 = vadd.f32 %v8214_v19, %v8213_v16 }
 0x286   : > { %v8188_v22 = vpop.f32.mrb[48].mxu1 }
 0x287   : > { %v8189_v24 = vpop.f32.mrb[49].mxu1 }
 0x288   : > { %v8190_v25 = vadd.f32 %v8189_v24, %v8188_v22  ;;  %v8191_v26 = vpop.f32.mrb[50].mxu1 }
 0x289   : > { %v8192_v27 = vpop.f32.mrb[51].mxu1 }
 0x28a   : > { %v6360_v28 = vadd.f32 %v8190_v25, %v6319_v62  ;;  %v8193_v29 = vadd.f32 %v8192_v27, %v8191_v26 }
 0x28c   : > { %v6363_v30 = vadd.f32 %v8193_v29, %v6322_v0  ;;  %v6401_v31 = vadd.f32 %v8212_v15, %v6360_v28 }
 0x28e   : > { %v6404_v32 = vadd.f32 %v8215_v20, %v6363_v30 }
 0x299   : > { %v8254_v33 = vpop.f32.mrb[48].mxu0 }
 0x29a   : > { %v8255_v34 = vpop.f32.mrb[49].mxu0 }
 0x29b   : > { %v8256_v35 = vadd.f32 %v8255_v34, %v8254_v33  ;;  %v8257_v36 = vpop.f32.mrb[50].mxu0 }
 0x29c   : > { %v8258_v23 = vpop.f32.mrb[51].mxu0 }
 0x29d   : > { %v8259_v37 = vadd.f32 %v8258_v23, %v8257_v36 }
 0x2a6   : > { %v8232_v38 = vpop.f32.mrb[52].mxu1 }
 0x2a7   : > { %v8233_v39 = vpop.f32.mrb[53].mxu1 }
 0x2a8   : > { %v8234_v40 = vadd.f32 %v8233_v39, %v8232_v38  ;;  %v8235_v41 = vpop.f32.mrb[54].mxu1 }
 0x2a9   : > { %v8236_v42 = vpop.f32.mrb[55].mxu1 }
 0x2aa   : > { %v6442_v43 = vadd.f32 %v8234_v40, %v6401_v31  ;;  %v8237_v44 = vadd.f32 %v8236_v42, %v8235_v41 }
 0x2ac   : > { %v6445_v45 = vadd.f32 %v8237_v44, %v6404_v32  ;;  %v6483_v46 = vadd.f32 %v8256_v35, %v6442_v43 }
 0x2ae   : > { %v6486_v47 = vadd.f32 %v8259_v37, %v6445_v45 }
 0x2b9   : > { %v8298_v48 = vpop.f32.mrb[52].mxu0 }
 0x2ba   : > { %v8299_v49 = vpop.f32.mrb[53].mxu0 }
 0x2bb   : > { %v8300_v50 = vadd.f32 %v8299_v49, %v8298_v48  ;;  %v8301_v51 = vpop.f32.mrb[54].mxu0 }
 0x2bc   : > { %v8302_v52 = vpop.f32.mrb[55].mxu0 }
 0x2bd   : > { %v8303_v53 = vadd.f32 %v8302_v52, %v8301_v51 }
 0x2c6   : > { %v8276_v54 = vpop.f32.mrb[56].mxu1 }
 0x2c7   : > { %v8277_v55 = vpop.f32.mrb[57].mxu1 }
 0x2c8   : > { %v8278_v56 = vadd.f32 %v8277_v55, %v8276_v54  ;;  %v8279_v57 = vpop.f32.mrb[58].mxu1 }
 0x2c9   : > { %v8280_v58 = vpop.f32.mrb[59].mxu1 }
 0x2ca   : > { %v6524_v59 = vadd.f32 %v8278_v56, %v6483_v46  ;;  %v8281_v60 = vadd.f32 %v8280_v58, %v8279_v57  ;;  %v6899_v57 = vld [vmem:[%s11344_s3] sm:$0xff] }
 0x2cc   : > { %v6527_v61 = vadd.f32 %v8281_v60, %v6486_v47  ;;  %v6565_v62 = vadd.f32 %v8300_v50, %v6524_v59 }
 0x2ce   : > { %v6568_v63 = vadd.f32 %v8303_v53, %v6527_v61 }
 0x2d9   : > { %v8342_v0 = vpop.f32.mrb[56].mxu0 }
 0x2da   : > { %v8343_v1 = vpop.f32.mrb[57].mxu0 }
 0x2db   : > { %v8344_v2 = vadd.f32 %v8343_v1, %v8342_v0  ;;  %v8345_v3 = vpop.f32.mrb[58].mxu0  ;;  %v6903_v1 = vld [vmem:[%s11345_s4] sm:$0x1] }
 0x2dc   : > { %v8346_v4 = vpop.f32.mrb[59].mxu0 }
 0x2dd   : > { %v8347_v5 = vadd.f32 %v8346_v4, %v8345_v3 }
 0x2e6   : > { %v8320_v6 = vpop.f32.mrb[60].mxu1 }
 0x2e7   : > { %v8321_v7 = vpop.f32.mrb[61].mxu1 }
 0x2e8   : > { %v8322_v8 = vadd.f32 %v8321_v7, %v8320_v6  ;;  %v8323_v9 = vpop.f32.mrb[62].mxu1 }
 0x2e9   : > { %v8324_v10 = vpop.f32.mrb[63].mxu1 }
 0x2ea   : > { %v6606_v11 = vadd.f32 %v8322_v8, %v6565_v62  ;;  %v8325_v12 = vadd.f32 %v8324_v10, %v8323_v9  ;;  %v6900_v62 = vld [vmem:[%s11344_s3 + $0x8] sm:$0xff] }
 0x2ec   : > { %v6609_v13 = vadd.f32 %v8325_v12, %v6568_v63  ;;  %v6647_v14 = vadd.f32 %v8344_v2, %v6606_v11 }
 0x2ee   : > { %v6650_v15 = vadd.f32 %v8347_v5, %v6609_v13 }
 0x2f9   : > { %v8386_v16 = vpop.f32.mrb[60].mxu0 }
 0x2fa   : > { %v8387_v17 = vpop.f32.mrb[61].mxu0 }
 0x2fb   : > { %v8388_v18 = vadd.f32 %v8387_v17, %v8386_v16  ;;  %v8389_v19 = vpop.f32.mrb[62].mxu0 }
 0x2fc   : > { %v8390_v20 = vpop.f32.mrb[63].mxu0 }
 0x2fd   : > { %v8391_v21 = vadd.f32 %v8390_v20, %v8389_v19 }
 0x306   : > { %v8364_v22 = vpop.f32.mrb[64].mxu1 }
 0x307   : > { %v8365_v24 = vpop.f32.mrb[65].mxu1 }
 0x308   : > { %v8366_v25 = vadd.f32 %v8365_v24, %v8364_v22  ;;  %v8367_v26 = vpop.f32.mrb[66].mxu1 }
 0x309   : > { %v8368_v27 = vpop.f32.mrb[67].mxu1 }
 0x30a   : > { %v6688_v28 = vadd.f32 %v8366_v25, %v6647_v14  ;;  %v8369_v29 = vadd.f32 %v8368_v27, %v8367_v26 }
 0x30c   : > { %v6691_v30 = vadd.f32 %v8369_v29, %v6650_v15  ;;  %v6729_v31 = vadd.f32 %v8388_v18, %v6688_v28 }
 0x30e   : > { %v6732_v32 = vadd.f32 %v8391_v21, %v6691_v30 }
 0x31a   : > { %v8430_v33 = vpop.f32.mrb[64].mxu0 }
 0x31b   : > { %v8431_v34 = vpop.f32.mrb[65].mxu0 }
 0x31c   : > { %v8432_v35 = vadd.f32 %v8431_v34, %v8430_v33  ;;  %v8433_v36 = vpop.f32.mrb[66].mxu0 }
 0x31d   : > { %v8434_v23 = vpop.f32.mrb[67].mxu0 }
 0x31e   : > { %v8435_v37 = vadd.f32 %v8434_v23, %v8433_v36 }
 0x326   : > { %v8408_v38 = vpop.f32.mrb[68].mxu1 }
 0x327   : > { %v8409_v39 = vpop.f32.mrb[69].mxu1 }
 0x328   : > { %v8410_v40 = vadd.f32 %v8409_v39, %v8408_v38  ;;  %v8411_v41 = vpop.f32.mrb[70].mxu1 }
 0x329   : > { %v8412_v42 = vpop.f32.mrb[71].mxu1 }
 0x32a   : > { %v6770_v43 = vadd.f32 %v8410_v40, %v6729_v31  ;;  %v8413_v44 = vadd.f32 %v8412_v42, %v8411_v41 }
 0x32c   : > { %v6773_v45 = vadd.f32 %v8413_v44, %v6732_v32  ;;  %v6811_v46 = vadd.f32 %v8432_v35, %v6770_v43 }
 0x32e   : > { %v6814_v47 = vadd.f32 %v8435_v37, %v6773_v45 }
 0x346   : > { %v8452_v48 = vpop.f32.mrb[72].mxu1 }
 0x347   : > { %v8453_v49 = vpop.f32.mrb[73].mxu1 }
 0x348   : > { %v8454_v50 = vadd.f32 %v8453_v49, %v8452_v48  ;;  %v8455_v51 = vpop.f32.mrb[74].mxu1 }
 0x349   : > { %v8456_v53 = vpop.f32.mrb[75].mxu1 }
 0x34a   : > { %v6852_v54 = vadd.f32 %v8454_v50, %v6811_v46  ;;  %v8457_v55 = vadd.f32 %v8456_v53, %v8455_v51 }
 0x34b   : > { %v6892_v52 = vpop.f32.mrb[68].mxu0 }
 0x34c   : > { %v6894_v56 = vpop.f32.mrb[69].mxu0  ;;  %v6893_v59 = vadd.f32 %v6892_v52, %v6852_v54  ;;  %v6855_v60 = vadd.f32 %v8457_v55, %v6814_v47 }
 0x34d   : > { %v6895_v58 = vpop.f32.mrb[70].mxu0 }
 0x34e   : > { %v6897_v61 = vpop.f32.mrb[71].mxu0  ;;  %v6901_v63 = vadd.f32 %v6899_v57, %v6893_v59  ;;  %v6896_v0 = vadd.f32 %v6895_v58, %v6855_v60 }
 0x350   : > { %v6907_v2 = vrot.slane %v6901_v63, 7  ;;  %v6902_v3 = vadd.f32 %v6900_v62, %v6896_v0 }
 0x352   : > { %v6908_v4 = vrot.slane %v6902_v3, 7  ;;  %v6913_v5 = vsel %vm6906_vm1, %v6903_v1, %v6907_v2 }
 0x353   : > { %6915 = vst.msk [vmem:[%s217_s6] sm:$0xff] %vm5378_vm0, %v6913_v5 }
 0x354   : > { %v6909_v6 = vsel %vm6906_vm1, %v6907_v2, %v6908_v4  ;;  %v6914_v7 = vsel %vm6906_vm1, %v6908_v4, 0.0 }
 0x355   : > { %6916 = vst.msk [vmem:[%s217_s6 + $0x8] sm:$0xff] %vm5378_vm0, %v6909_v6  ;;  %6917 = vst.msk [vmem:[%s217_s6 + $0x10] sm:$0xff] %vm5378_vm0, %v6914_v7 }
 0x356   : > { %9215 = shalt.err (!%p9212_p3)
}
 0x357   : > { %s9216_s17 = scalar_lea.hbm %s11291_s12, 384  ;;  %s9220_s26 = scalar_lea.hbm %s11346_s5, 768 }
 0x358   : > { %p9217_p4 = scmp.ne.s32.totalorder %s11291_s12, %s9216_s17  ;;  %p9221_p9 = scmp.lt.u32.totalorder %s11291_s12, %s11346_s5 }
 0x359   : > { %p9222_p10 = scmp.lt.u32.totalorder %s9220_s26, %s9216_s17  ;;  %p9224_p12 = scmp.lt.u32.totalorder %s9216_s17, %s11291_s12 }
 0x35a   : > { %p9218_p7 = pnand %p9217_p4, %p9338_p5 }
 0x35b   : > { %p9223_p11 = por %p9222_p10, %p9221_p9 }
 0x35c   : > { %p9219_p8 = pneg %p9218_p7 }
 0x35d   : > { %p9225_p13 = por %p9224_p12, %p9223_p11 }
 0x35f   : > { %p9226_p0 = pnand %p9225_p13, %p9219_p8 }
 0x361   : > { %9229 = shalt.err (!%p9226_p0)
}
 0x362   : > { %s9268_s8 = smov 128   ;;  %s9269_s6 = smov 8  }
 0x363   : > { %8461 = dma.vmem_to_hbm [thread:$0]  (%p9338_p5), %s11293_s9, 384, %s11291_s12, %s11300_s22, %s9268_s8, %s9268_s8, %s9269_s6  }
 0x364 PF: > { %p8467_p1 = scmp.ge.s32.totalorder %s9264_s21, 2  ;;  %s6947_s10 = sand.u32 1, %s9252_s18  }
 0x365   : > { %s6948_s11 = scalar_lea.sflag [#allocation3], %s6947_s10 }
 0x366   : > { %p8464_p2 = pnand %p8467_p1, %p9342_p6 }
 0x368   : > { %9247 = dma.done.wait (!%p8464_p2), %s6948_s11, 384  }
 0x369   : > { %9249 = vsyncadd (!%p8464_p2), %s6948_s11, 4294966912  ;;  %p15_p3 = scmp.ge.s32.totalorder %s9325_s24, 4   ;;  %s11349_s18 = smov %s9256_s19 }
 0x36a   : > { %s11350_s19 = smov %s9260_s20  ;;  %s11351_s20 = smov %s9336_s27 }
 0x36b   : > { %s11352_s21 = smov %s9325_s24  ;;  %17 = sbr.rel (!%p15_p3) target bundleno = 3 (0x3), region = 75 }
 0x372   :  { %6953 = vsyncpa [#allocation3], 1 }
 0x373   :  { %6955 = vsyncpa [#allocation3 + $0x1], 1 }

</bundles_post_ra>
